<compile_context>
chip_gen: v5e
topology: v5e:2x2
jax: 0.10.0
libtpu: 0.0.40
codegen_flags: <defaults>
</compile_context>

<pallas_src>
import functools

import jax
import jax.numpy as jnp
from jax import lax
from jax.experimental import pallas as pl
from jax.experimental.pallas import tpu as pltpu


# -----------------------------------------------------------------------------
# Fused kernel: conv3x3 -> BN -> LeakyReLU -> conv3x3 -> BN -> (+identity) -> LeakyReLU
# -----------------------------------------------------------------------------

def _basic_block_kernel(xp_ref, w1_ref, b1_ref, w2_ref, b2_ref, o_ref,
                        col_ref, mid_ref, *, Wp, W, L, Lp, roff, offs, C):
    """One grid step == one batch element.

    Layout: channels on the sublane axis, flattened padded spatial (lane-dense, padded
    to Lp = ceil(L/128)*128) on the lane axis.  Each conv is ONE MXU matmul
    (C, 9C) @ (9C, Lp) built from an in-VMEM im2col of the nine shifted taps.
    """
    def leaky(v):                                           # LeakyReLU(0.2)
        return jnp.where(v > 0.0, v, 0.2 * v)

    # Valid-output-column mask, generated in-kernel (no HBM mask input):
    # a column p is a real output iff p % Wp < W (window doesn't wrap a row) and p < L.
    lane = lax.broadcasted_iota(jnp.int32, (1, Lp), 1)
    valid = jnp.logical_and(lane % Wp < W, lane < L)

    # ---- conv1 + BN1 + LeakyReLU ---------------------------------------------------------
    # Stage the nine dilated 3x3 taps (shifted lane slices of the padded activation) into
    # the bf16 im2col scratch once, then a single K=9C MXU matmul with f32 accumulation.
    for t, off in enumerate(offs):
        col_ref[t * C:(t + 1) * C, :] = xp_ref[0, :, off:off + Lp]
    y = jnp.dot(w1_ref[...], col_ref[...],
                preferred_element_type=jnp.float32) + b1_ref[...]   # BN1 scale folded in w1
    y = leaky(y)

    # Re-pad conv1's output into the bf16 `mid` plane so conv2 sees proper zero borders.
    # Only the halo lanes are zeroed (the masked interior store covers everything else);
    # done every step so correctness never depends on scratch state from other iterations.
    mid_ref[:, :roff] = jnp.zeros((C, roff), mid_ref.dtype)
    mid_ref[:, roff + Lp:] = jnp.zeros((C, mid_ref.shape[1] - roff - Lp), mid_ref.dtype)
    mid_ref[:, roff:roff + Lp] = jnp.where(valid, y, 0.0).astype(mid_ref.dtype)

    # ---- conv2 + BN2, residual add fused in the epilogue, final LeakyReLU -----------------
    for t, off in enumerate(offs):
        col_ref[t * C:(t + 1) * C, :] = mid_ref[:, off:off + Lp]
    z = jnp.dot(w2_ref[...], col_ref[...],
                preferred_element_type=jnp.float32) + b2_ref[...]   # BN2 scale folded in w2
    z = z + xp_ref[0, :, roff:roff + Lp].astype(jnp.float32)        # identity (bf16 act)
    o_ref[0] = leaky(z).astype(o_ref.dtype)


# -----------------------------------------------------------------------------
# Wrapper
# -----------------------------------------------------------------------------

def basic_block_forward(x_nchw, params, dilation=1):
    """x_nchw: (B, C, H, W) float32.  Implements BasicBlock with stride=1, downsample=None."""
    B, C, H, W = x_nchw.shape
    d = dilation
    Hp, Wp = H + 2 * d, W + 2 * d
    Np = Hp * Wp                              # flattened padded plane (true extent)
    L = H * Wp - 2 * d                        # flat output positions actually computed
    Lp = pl.cdiv(L, 128) * 128                # lane-dense (multiple of 128) output length
    roff = d * (Wp + 1)                       # flat offset of (h,w) -> (h+d, w+d)
    Npad = 2 * roff + Lp                      # activation length incl. tap headroom (>= Np)
    offs = tuple(d * (kh * Wp + kw) for kh in range(3) for kw in range(3))

    # Pre-processing is pad + reshape only (NCHW is already channel-major); cast once
    # to bf16 so the per-image HBM DMA is half the f32 size.
    xpad = jnp.pad(x_nchw, ((0, 0), (0, 0), (d, d), (d, d)))
    xp = xpad.reshape(B, C, Np)
    xp = jnp.pad(xp, ((0, 0), (0, 0), (0, Npad - Np))).astype(jnp.bfloat16)

    kernel = functools.partial(_basic_block_kernel, Wp=Wp, W=W, L=L, Lp=Lp,
                               roff=roff, offs=offs, C=C)

    out_flat = pl.pallas_call(
        kernel,
        out_shape=jax.ShapeDtypeStruct((B, C, Lp), jnp.float32),
        grid_spec=pltpu.PrefetchScalarGridSpec(
            num_scalar_prefetch=0,
            grid=(B,),                                              # one image per grid step
            in_specs=[
                pl.BlockSpec((1, C, Npad), lambda b: (b, 0, 0)),    # padded bf16 activation
                pl.BlockSpec((C, 9 * C), lambda b: (0, 0)),         # conv1 weight (scale-folded)
                pl.BlockSpec((C, 1), lambda b: (0, 0)),             # bn1 shift
                pl.BlockSpec((C, 9 * C), lambda b: (0, 0)),         # conv2 weight (scale-folded)
                pl.BlockSpec((C, 1), lambda b: (0, 0)),             # bn2 shift
            ],
            out_specs=pl.BlockSpec((1, C, Lp), lambda b: (b, 0, 0)),
            scratch_shapes=[
                pltpu.VMEM((9 * C, Lp), jnp.bfloat16),              # shared im2col staging
                pltpu.VMEM((C, Npad), jnp.bfloat16),                # padded conv1 output plane
            ],
        ),
        compiler_params=pltpu.CompilerParams(
            dimension_semantics=("parallel",),                      # batch axis -> dual-TC v7x
            # Tiny footprint here; raise this (v5e/v6e have 128 MiB) once row tiling lands.
            vmem_limit_bytes=32 * 1024 * 1024,
        ),
    )(xp, params["w1"], params["b1"], params["w2"], params["b2"])

    # Post-processing: drop lane padding + row-wrap columns; result is already NCHW.
    out = out_flat[:, :, :L]
    out = jnp.pad(out, ((0, 0), (0, 0), (0, H * Wp - L)))
    return out.reshape(B, C, H, Wp)[:, :, :, :W]


# -----------------------------------------------------------------------------
# Deterministic parameters (PyTorch layouts, folded inference BatchNorm)
# -----------------------------------------------------------------------------

def make_params(key, channels):
    C = channels
    ks = jax.random.split(key, 10)

    def conv_w(k):
        # PyTorch conv3x3 weight, OIHW, bias=False.
        return 0.1 * jax.random.normal(k, (C, C, 3, 3), jnp.float32)

    def folded_bn(kk):
        k1, k2, k3, k4 = kk
        gamma = 1.0 + 0.1 * jax.random.normal(k1, (C,), jnp.float32)
        beta = 0.1 * jax.random.normal(k2, (C,), jnp.float32)
        mean = 0.1 * jax.random.normal(k3, (C,), jnp.float32)
        var = 1.0 + 0.1 * jnp.abs(jax.random.normal(k4, (C,), jnp.float32))
        scale = gamma * lax.rsqrt(var + 1e-5)
        shift = beta - mean * scale
        return scale, shift

    w1 = conv_w(ks[8])
    w2 = conv_w(ks[9])
    s1, b1 = folded_bn(ks[0:4])
    s2, b2 = folded_bn(ks[4:8])

    # Inference-form BN folded into the conv weights: BN(conv(x)) == (s*W) (*) x + shift.
    w1f = w1 * s1[:, None, None, None]
    w2f = w2 * s2[:, None, None, None]

    def pack(w_oihw):
        # OIHW -> (Cout, 9*Cin); column index = (kh*3+kw)*Cin + ci, matching im2col rows.
        return jnp.transpose(w_oihw, (0, 2, 3, 1)).reshape(C, 9 * C).astype(jnp.bfloat16)

    return dict(
        w1=pack(w1f), b1=b1.reshape(C, 1),
        w2=pack(w2f), b2=b2.reshape(C, 1),
        w1_f32=w1f, w2_f32=w2f,            # f32 copies for the XLA reference
    )


def basic_block_reference(x, params, dilation=1):
    """Pure-XLA float32 reference (same folded weights) used for validation."""
    d = dilation

    def conv(inp, w_oihw):
        w = jnp.transpose(w_oihw, (2, 3, 1, 0))            # OIHW -> HWIO
        return lax.conv_general_dilated(
            inp, w, window_strides=(1, 1), padding=[(d, d), (d, d)],
            rhs_dilation=(d, d), dimension_numbers=("NCHW", "HWIO", "NCHW"))

    def leaky(v):
        return jnp.where(v > 0.0, v, 0.2 * v)

    b1 = params["b1"].reshape(1, -1, 1, 1)
    b2 = params["b2"].reshape(1, -1, 1, 1)
    y = leaky(conv(x, params["w1_f32"]) + b1)
    z = conv(y, params["w2_f32"]) + b2 + x
    return leaky(z)


# -----------------------------------------------------------------------------
# Main
# -----------------------------------------------------------------------------

if __name__ == "__main__":
    B, C, H, W = 4, 16, 16, 16      # inplanes == planes (downsample=None), stride=1
    dilation = 1

    key = jax.random.PRNGKey(0)
    kx, kp = jax.random.split(key)
    x = jax.random.normal(kx, (B, C, H, W), jnp.float32)
    params = make_params(kp, C)

    fwd = jax.jit(lambda xx, pp: basic_block_forward(xx, pp, dilation=dilation))
    out = jax.block_until_ready(fwd(x, params))

    assert out.shape == x.shape, (out.shape, x.shape)
    assert bool(jnp.all(jnp.isfinite(out)))

    # Validate against the f32 reference.  The kernel uses bf16 MXU operands, a bf16
    # activation / mid plane and a bf16 residual read with f32 accumulation, so the
    # tolerance is loose but far below any indexing-bug signal.
    ref = basic_block_reference(x, params, dilation=dilation)
    max_err = float(jnp.max(jnp.abs(out - ref)))
    assert max_err < 0.3, f"max abs err vs reference: {max_err}"

    print("KERNEL_OK")
</pallas_src>

<mosaic_0001>
module attributes {stable_mosaic.version = 11 : i64} {
  func.func @_basic_block_kernel(%arg0: i32, %arg1: memref<1x16x422xbf16, #tpu.memory_space<vmem>>, %arg2: memref<16x144xbf16, #tpu.memory_space<vmem>>, %arg3: memref<16x1xf32, #tpu.memory_space<vmem>>, %arg4: memref<16x144xbf16, #tpu.memory_space<vmem>>, %arg5: memref<16x1xf32, #tpu.memory_space<vmem>>, %arg6: memref<1x16x384xf32, #tpu.memory_space<vmem>>, %arg7: memref<144x384xbf16, #tpu.memory_space<vmem>>, %arg8: memref<16x422xbf16, #tpu.memory_space<vmem>>) attributes {dimension_semantics = [#tpu.dimension_semantics<parallel>], iteration_bounds = array<i64: 4>, scalar_prefetch = 0 : i64, scratch_operands = 2 : i64, tpu.core_type = #tpu.core_type<tc>, window_params = [{transform_indices = @transform_0, window_bounds = array<i64: 1, 16, 422>}, {pipeline_mode = #tpu.pipeline_mode<synchronous>, transform_indices = @transform_1, window_bounds = array<i64: 16, 144>}, {pipeline_mode = #tpu.pipeline_mode<synchronous>, transform_indices = @transform_2, window_bounds = array<i64: 16, 1>}, {pipeline_mode = #tpu.pipeline_mode<synchronous>, transform_indices = @transform_3, window_bounds = array<i64: 16, 144>}, {pipeline_mode = #tpu.pipeline_mode<synchronous>, transform_indices = @transform_4, window_bounds = array<i64: 16, 1>}, {transform_indices = @transform_5, window_bounds = array<i64: 1, 16, 384>}]} {
    %0 = tpu.iota {dimensions = array<i32: 1>} : vector<1x384xi32>
    %c18_i32 = arith.constant 18 : i32
    %c0_i32 = arith.constant 0 : i32
    %1 = arith.cmpi eq, %c18_i32, %c0_i32 : i32
    %c1_i32 = arith.constant 1 : i32
    %2 = arith.select %1, %c1_i32, %c18_i32 : i32
    %3 = vector.broadcast %2 : i32 to vector<1x384xi32>
    %4 = arith.remsi %0, %3 : vector<1x384xi32>
    %c0_i32_0 = arith.constant 0 : i32
    %5 = vector.broadcast %c0_i32_0 : i32 to vector<1x384xi32>
    %6 = arith.cmpi ne, %4, %5 : vector<1x384xi32>
    %c0_i32_1 = arith.constant 0 : i32
    %7 = vector.broadcast %c0_i32_1 : i32 to vector<1x384xi32>
    %8 = arith.cmpi slt, %4, %7 : vector<1x384xi32>
    %c0_i32_2 = arith.constant 0 : i32
    %9 = arith.cmpi slt, %2, %c0_i32_2 : i32
    %10 = vector.broadcast %9 : i1 to vector<1x384xi1>
    %11 = vector.broadcast %10 : vector<1x384xi1> to vector<1x384xi1>
    %12 = arith.xori %8, %11 : vector<1x384xi1>
    %13 = arith.andi %12, %6 : vector<1x384xi1>
    %14 = vector.broadcast %2 : i32 to vector<1x384xi32>
    %15 = arith.addi %4, %14 : vector<1x384xi32>
    %16 = arith.select %13, %15, %4 : vector<1x384xi1>, vector<1x384xi32>
    %c16_i32 = arith.constant 16 : i32
    %17 = vector.broadcast %c16_i32 : i32 to vector<1x384xi32>
    %18 = arith.cmpi slt, %16, %17 : vector<1x384xi32>
    %c286_i32 = arith.constant 286 : i32
    %19 = vector.broadcast %c286_i32 : i32 to vector<1x384xi32>
    %20 = arith.cmpi slt, %0, %19 : vector<1x384xi32>
    %21 = arith.andi %18, %20 : vector<1x384xi1>
    %c0 = arith.constant 0 : index
    %c0_3 = arith.constant 0 : index
    %c0_4 = arith.constant 0 : index
    %22 = vector.load %arg1[%c0, %c0_3, %c0_4] : memref<1x16x422xbf16, #tpu.memory_space<vmem>>, vector<1x16x384xbf16>
    %23 = vector.shape_cast %22 : vector<1x16x384xbf16> to vector<16x384xbf16>
    %c0_5 = arith.constant 0 : index
    %c0_6 = arith.constant 0 : index
    %24 = vector.load %arg7[%c0_5, %c0_6] : memref<144x384xbf16, #tpu.memory_space<vmem>>, vector<16x384xbf16>
    tpu.vector_store %arg7[%c0_5, %c0_6], %23 {strides = array<i32>} : memref<144x384xbf16, #tpu.memory_space<vmem>>, vector<16x384xbf16>,
    %c0_7 = arith.constant 0 : index
    %c0_8 = arith.constant 0 : index
    %c1 = arith.constant 1 : index
    %25 = vector.load %arg1[%c0_7, %c0_8, %c1] : memref<1x16x422xbf16, #tpu.memory_space<vmem>>, vector<1x16x384xbf16>
    %26 = vector.shape_cast %25 : vector<1x16x384xbf16> to vector<16x384xbf16>
    %c16 = arith.constant 16 : index
    %c0_9 = arith.constant 0 : index
    %27 = vector.load %arg7[%c16, %c0_9] : memref<144x384xbf16, #tpu.memory_space<vmem>>, vector<16x384xbf16>
    tpu.vector_store %arg7[%c16, %c0_9], %26 {strides = array<i32>} : memref<144x384xbf16, #tpu.memory_space<vmem>>, vector<16x384xbf16>,
    %c0_10 = arith.constant 0 : index
    %c0_11 = arith.constant 0 : index
    %c2 = arith.constant 2 : index
    %28 = vector.load %arg1[%c0_10, %c0_11, %c2] : memref<1x16x422xbf16, #tpu.memory_space<vmem>>, vector<1x16x384xbf16>
    %29 = vector.shape_cast %28 : vector<1x16x384xbf16> to vector<16x384xbf16>
    %c32 = arith.constant 32 : index
    %c0_12 = arith.constant 0 : index
    %30 = vector.load %arg7[%c32, %c0_12] : memref<144x384xbf16, #tpu.memory_space<vmem>>, vector<16x384xbf16>
    tpu.vector_store %arg7[%c32, %c0_12], %29 {strides = array<i32>} : memref<144x384xbf16, #tpu.memory_space<vmem>>, vector<16x384xbf16>,
    %c0_13 = arith.constant 0 : index
    %c0_14 = arith.constant 0 : index
    %c18 = arith.constant 18 : index
    %31 = vector.load %arg1[%c0_13, %c0_14, %c18] : memref<1x16x422xbf16, #tpu.memory_space<vmem>>, vector<1x16x384xbf16>
    %32 = vector.shape_cast %31 : vector<1x16x384xbf16> to vector<16x384xbf16>
    %c48 = arith.constant 48 : index
    %c0_15 = arith.constant 0 : index
    %33 = vector.load %arg7[%c48, %c0_15] : memref<144x384xbf16, #tpu.memory_space<vmem>>, vector<16x384xbf16>
    tpu.vector_store %arg7[%c48, %c0_15], %32 {strides = array<i32>} : memref<144x384xbf16, #tpu.memory_space<vmem>>, vector<16x384xbf16>,
    %c0_16 = arith.constant 0 : index
    %c0_17 = arith.constant 0 : index
    %c19 = arith.constant 19 : index
    %34 = vector.load %arg1[%c0_16, %c0_17, %c19] : memref<1x16x422xbf16, #tpu.memory_space<vmem>>, vector<1x16x384xbf16>
    %35 = vector.shape_cast %34 : vector<1x16x384xbf16> to vector<16x384xbf16>
    %c64 = arith.constant 64 : index
    %c0_18 = arith.constant 0 : index
    %36 = vector.load %arg7[%c64, %c0_18] : memref<144x384xbf16, #tpu.memory_space<vmem>>, vector<16x384xbf16>
    tpu.vector_store %arg7[%c64, %c0_18], %35 {strides = array<i32>} : memref<144x384xbf16, #tpu.memory_space<vmem>>, vector<16x384xbf16>,
    %c0_19 = arith.constant 0 : index
    %c0_20 = arith.constant 0 : index
    %c20 = arith.constant 20 : index
    %37 = vector.load %arg1[%c0_19, %c0_20, %c20] : memref<1x16x422xbf16, #tpu.memory_space<vmem>>, vector<1x16x384xbf16>
    %38 = vector.shape_cast %37 : vector<1x16x384xbf16> to vector<16x384xbf16>
    %c80 = arith.constant 80 : index
    %c0_21 = arith.constant 0 : index
    %39 = vector.load %arg7[%c80, %c0_21] : memref<144x384xbf16, #tpu.memory_space<vmem>>, vector<16x384xbf16>
    tpu.vector_store %arg7[%c80, %c0_21], %38 {strides = array<i32>} : memref<144x384xbf16, #tpu.memory_space<vmem>>, vector<16x384xbf16>,
    %c0_22 = arith.constant 0 : index
    %c0_23 = arith.constant 0 : index
    %c36 = arith.constant 36 : index
    %40 = vector.load %arg1[%c0_22, %c0_23, %c36] : memref<1x16x422xbf16, #tpu.memory_space<vmem>>, vector<1x16x384xbf16>
    %41 = vector.shape_cast %40 : vector<1x16x384xbf16> to vector<16x384xbf16>
    %c96 = arith.constant 96 : index
    %c0_24 = arith.constant 0 : index
    %42 = vector.load %arg7[%c96, %c0_24] : memref<144x384xbf16, #tpu.memory_space<vmem>>, vector<16x384xbf16>
    tpu.vector_store %arg7[%c96, %c0_24], %41 {strides = array<i32>} : memref<144x384xbf16, #tpu.memory_space<vmem>>, vector<16x384xbf16>,
    %c0_25 = arith.constant 0 : index
    %c0_26 = arith.constant 0 : index
    %c37 = arith.constant 37 : index
    %43 = vector.load %arg1[%c0_25, %c0_26, %c37] : memref<1x16x422xbf16, #tpu.memory_space<vmem>>, vector<1x16x384xbf16>
    %44 = vector.shape_cast %43 : vector<1x16x384xbf16> to vector<16x384xbf16>
    %c112 = arith.constant 112 : index
    %c0_27 = arith.constant 0 : index
    %45 = vector.load %arg7[%c112, %c0_27] : memref<144x384xbf16, #tpu.memory_space<vmem>>, vector<16x384xbf16>
    tpu.vector_store %arg7[%c112, %c0_27], %44 {strides = array<i32>} : memref<144x384xbf16, #tpu.memory_space<vmem>>, vector<16x384xbf16>,
    %c0_28 = arith.constant 0 : index
    %c0_29 = arith.constant 0 : index
    %c38 = arith.constant 38 : index
    %46 = vector.load %arg1[%c0_28, %c0_29, %c38] : memref<1x16x422xbf16, #tpu.memory_space<vmem>>, vector<1x16x384xbf16>
    %47 = vector.shape_cast %46 : vector<1x16x384xbf16> to vector<16x384xbf16>
    %c128 = arith.constant 128 : index
    %c0_30 = arith.constant 0 : index
    %48 = vector.load %arg7[%c128, %c0_30] : memref<144x384xbf16, #tpu.memory_space<vmem>>, vector<16x384xbf16>
    tpu.vector_store %arg7[%c128, %c0_30], %47 {strides = array<i32>} : memref<144x384xbf16, #tpu.memory_space<vmem>>, vector<16x384xbf16>,
    %c0_31 = arith.constant 0 : index
    %c0_32 = arith.constant 0 : index
    %49 = vector.load %arg2[%c0_31, %c0_32] : memref<16x144xbf16, #tpu.memory_space<vmem>>, vector<16x144xbf16>
    %c0_33 = arith.constant 0 : index
    %c0_34 = arith.constant 0 : index
    %50 = vector.load %arg7[%c0_33, %c0_34] : memref<144x384xbf16, #tpu.memory_space<vmem>>, vector<144x384xbf16>
    %cst = arith.constant dense<0.000000e+00> : vector<16x384xf32>
    %51 = tpu.matmul %49, %50, %cst {dimension_numbers = #tpu.dot_dimension_numbers<[1], [0], [0], [1], [0, 0, 1, 1], [], []>} : vector<16x144xbf16>, vector<144x384xbf16>, vector<16x384xf32> -> vector<16x384xf32>
    %c0_35 = arith.constant 0 : index
    %c0_36 = arith.constant 0 : index
    %52 = vector.load %arg3[%c0_35, %c0_36] : memref<16x1xf32, #tpu.memory_space<vmem>>, vector<16x1xf32>
    %53 = vector.broadcast %52 : vector<16x1xf32> to vector<16x384xf32>
    %54 = arith.addf %51, %53 : vector<16x384xf32>
    %cst_37 = arith.constant 0.000000e+00 : f32
    %55 = vector.broadcast %cst_37 : f32 to vector<16x384xf32>
    %56 = arith.cmpf ogt, %54, %55 : vector<16x384xf32>
    %cst_38 = arith.constant 2.000000e-01 : f32
    %57 = vector.broadcast %cst_38 : f32 to vector<16x384xf32>
    %58 = arith.mulf %57, %54 : vector<16x384xf32>
    %59 = arith.select %56, %54, %58 : vector<16x384xi1>, vector<16x384xf32>
    %cst_39 = arith.constant 0.000000e+00 : bf16
    %60 = vector.broadcast %cst_39 : bf16 to vector<16x19xbf16>
    %c0_40 = arith.constant 0 : index
    %c0_41 = arith.constant 0 : index
    %61 = vector.load %arg8[%c0_40, %c0_41] : memref<16x422xbf16, #tpu.memory_space<vmem>>, vector<16x19xbf16>
    tpu.vector_store %arg8[%c0_40, %c0_41], %60 {strides = array<i32>} : memref<16x422xbf16, #tpu.memory_space<vmem>>, vector<16x19xbf16>,
    %cst_42 = arith.constant 0.000000e+00 : bf16
    %62 = vector.broadcast %cst_42 : bf16 to vector<16x19xbf16>
    %c0_43 = arith.constant 0 : index
    %c403 = arith.constant 403 : index
    %63 = vector.load %arg8[%c0_43, %c403] : memref<16x422xbf16, #tpu.memory_space<vmem>>, vector<16x19xbf16>
    tpu.vector_store %arg8[%c0_43, %c403], %62 {strides = array<i32>} : memref<16x422xbf16, #tpu.memory_space<vmem>>, vector<16x19xbf16>,
    %cst_44 = arith.constant 0.000000e+00 : f32
    %64 = vector.shape_cast %21 : vector<1x384xi1> to vector<1x384xi1>
    %65 = vector.broadcast %64 : vector<1x384xi1> to vector<16x384xi1>
    %66 = vector.broadcast %cst_44 : f32 to vector<16x384xf32>
    %67 = arith.select %65, %59, %66 : vector<16x384xi1>, vector<16x384xf32>
    %68 = arith.truncf %67 : vector<16x384xf32> to vector<16x384xbf16>
    %c0_45 = arith.constant 0 : index
    %c19_46 = arith.constant 19 : index
    %69 = vector.load %arg8[%c0_45, %c19_46] : memref<16x422xbf16, #tpu.memory_space<vmem>>, vector<16x384xbf16>
    tpu.vector_store %arg8[%c0_45, %c19_46], %68 {strides = array<i32>} : memref<16x422xbf16, #tpu.memory_space<vmem>>, vector<16x384xbf16>,
    %c0_47 = arith.constant 0 : index
    %c0_48 = arith.constant 0 : index
    %70 = vector.load %arg8[%c0_47, %c0_48] : memref<16x422xbf16, #tpu.memory_space<vmem>>, vector<16x384xbf16>
    %c0_49 = arith.constant 0 : index
    %c0_50 = arith.constant 0 : index
    %71 = vector.load %arg7[%c0_49, %c0_50] : memref<144x384xbf16, #tpu.memory_space<vmem>>, vector<16x384xbf16>
    tpu.vector_store %arg7[%c0_49, %c0_50], %70 {strides = array<i32>} : memref<144x384xbf16, #tpu.memory_space<vmem>>, vector<16x384xbf16>,
    %c0_51 = arith.constant 0 : index
    %c1_52 = arith.constant 1 : index
    %72 = vector.load %arg8[%c0_51, %c1_52] : memref<16x422xbf16, #tpu.memory_space<vmem>>, vector<16x384xbf16>
    %c16_53 = arith.constant 16 : index
    %c0_54 = arith.constant 0 : index
    %73 = vector.load %arg7[%c16_53, %c0_54] : memref<144x384xbf16, #tpu.memory_space<vmem>>, vector<16x384xbf16>
    tpu.vector_store %arg7[%c16_53, %c0_54], %72 {strides = array<i32>} : memref<144x384xbf16, #tpu.memory_space<vmem>>, vector<16x384xbf16>,
    %c0_55 = arith.constant 0 : index
    %c2_56 = arith.constant 2 : index
    %74 = vector.load %arg8[%c0_55, %c2_56] : memref<16x422xbf16, #tpu.memory_space<vmem>>, vector<16x384xbf16>
    %c32_57 = arith.constant 32 : index
    %c0_58 = arith.constant 0 : index
    %75 = vector.load %arg7[%c32_57, %c0_58] : memref<144x384xbf16, #tpu.memory_space<vmem>>, vector<16x384xbf16>
    tpu.vector_store %arg7[%c32_57, %c0_58], %74 {strides = array<i32>} : memref<144x384xbf16, #tpu.memory_space<vmem>>, vector<16x384xbf16>,
    %c0_59 = arith.constant 0 : index
    %c18_60 = arith.constant 18 : index
    %76 = vector.load %arg8[%c0_59, %c18_60] : memref<16x422xbf16, #tpu.memory_space<vmem>>, vector<16x384xbf16>
    %c48_61 = arith.constant 48 : index
    %c0_62 = arith.constant 0 : index
    %77 = vector.load %arg7[%c48_61, %c0_62] : memref<144x384xbf16, #tpu.memory_space<vmem>>, vector<16x384xbf16>
    tpu.vector_store %arg7[%c48_61, %c0_62], %76 {strides = array<i32>} : memref<144x384xbf16, #tpu.memory_space<vmem>>, vector<16x384xbf16>,
    %c0_63 = arith.constant 0 : index
    %c19_64 = arith.constant 19 : index
    %78 = vector.load %arg8[%c0_63, %c19_64] : memref<16x422xbf16, #tpu.memory_space<vmem>>, vector<16x384xbf16>
    %c64_65 = arith.constant 64 : index
    %c0_66 = arith.constant 0 : index
    %79 = vector.load %arg7[%c64_65, %c0_66] : memref<144x384xbf16, #tpu.memory_space<vmem>>, vector<16x384xbf16>
    tpu.vector_store %arg7[%c64_65, %c0_66], %78 {strides = array<i32>} : memref<144x384xbf16, #tpu.memory_space<vmem>>, vector<16x384xbf16>,
    %c0_67 = arith.constant 0 : index
    %c20_68 = arith.constant 20 : index
    %80 = vector.load %arg8[%c0_67, %c20_68] : memref<16x422xbf16, #tpu.memory_space<vmem>>, vector<16x384xbf16>
    %c80_69 = arith.constant 80 : index
    %c0_70 = arith.constant 0 : index
    %81 = vector.load %arg7[%c80_69, %c0_70] : memref<144x384xbf16, #tpu.memory_space<vmem>>, vector<16x384xbf16>
    tpu.vector_store %arg7[%c80_69, %c0_70], %80 {strides = array<i32>} : memref<144x384xbf16, #tpu.memory_space<vmem>>, vector<16x384xbf16>,
    %c0_71 = arith.constant 0 : index
    %c36_72 = arith.constant 36 : index
    %82 = vector.load %arg8[%c0_71, %c36_72] : memref<16x422xbf16, #tpu.memory_space<vmem>>, vector<16x384xbf16>
    %c96_73 = arith.constant 96 : index
    %c0_74 = arith.constant 0 : index
    %83 = vector.load %arg7[%c96_73, %c0_74] : memref<144x384xbf16, #tpu.memory_space<vmem>>, vector<16x384xbf16>
    tpu.vector_store %arg7[%c96_73, %c0_74], %82 {strides = array<i32>} : memref<144x384xbf16, #tpu.memory_space<vmem>>, vector<16x384xbf16>,
    %c0_75 = arith.constant 0 : index
    %c37_76 = arith.constant 37 : index
    %84 = vector.load %arg8[%c0_75, %c37_76] : memref<16x422xbf16, #tpu.memory_space<vmem>>, vector<16x384xbf16>
    %c112_77 = arith.constant 112 : index
    %c0_78 = arith.constant 0 : index
    %85 = vector.load %arg7[%c112_77, %c0_78] : memref<144x384xbf16, #tpu.memory_space<vmem>>, vector<16x384xbf16>
    tpu.vector_store %arg7[%c112_77, %c0_78], %84 {strides = array<i32>} : memref<144x384xbf16, #tpu.memory_space<vmem>>, vector<16x384xbf16>,
    %c0_79 = arith.constant 0 : index
    %c38_80 = arith.constant 38 : index
    %86 = vector.load %arg8[%c0_79, %c38_80] : memref<16x422xbf16, #tpu.memory_space<vmem>>, vector<16x384xbf16>
    %c128_81 = arith.constant 128 : index
    %c0_82 = arith.constant 0 : index
    %87 = vector.load %arg7[%c128_81, %c0_82] : memref<144x384xbf16, #tpu.memory_space<vmem>>, vector<16x384xbf16>
    tpu.vector_store %arg7[%c128_81, %c0_82], %86 {strides = array<i32>} : memref<144x384xbf16, #tpu.memory_space<vmem>>, vector<16x384xbf16>,
    %c0_83 = arith.constant 0 : index
    %c0_84 = arith.constant 0 : index
    %88 = vector.load %arg4[%c0_83, %c0_84] : memref<16x144xbf16, #tpu.memory_space<vmem>>, vector<16x144xbf16>
    %c0_85 = arith.constant 0 : index
    %c0_86 = arith.constant 0 : index
    %89 = vector.load %arg7[%c0_85, %c0_86] : memref<144x384xbf16, #tpu.memory_space<vmem>>, vector<144x384xbf16>
    %cst_87 = arith.constant dense<0.000000e+00> : vector<16x384xf32>
    %90 = tpu.matmul %88, %89, %cst_87 {dimension_numbers = #tpu.dot_dimension_numbers<[1], [0], [0], [1], [0, 0, 1, 1], [], []>} : vector<16x144xbf16>, vector<144x384xbf16>, vector<16x384xf32> -> vector<16x384xf32>
    %c0_88 = arith.constant 0 : index
    %c0_89 = arith.constant 0 : index
    %91 = vector.load %arg5[%c0_88, %c0_89] : memref<16x1xf32, #tpu.memory_space<vmem>>, vector<16x1xf32>
    %92 = vector.broadcast %91 : vector<16x1xf32> to vector<16x384xf32>
    %93 = arith.addf %90, %92 : vector<16x384xf32>
    %c0_90 = arith.constant 0 : index
    %c0_91 = arith.constant 0 : index
    %c19_92 = arith.constant 19 : index
    %94 = vector.load %arg1[%c0_90, %c0_91, %c19_92] : memref<1x16x422xbf16, #tpu.memory_space<vmem>>, vector<1x16x384xbf16>
    %95 = vector.shape_cast %94 : vector<1x16x384xbf16> to vector<16x384xbf16>
    %96 = arith.extf %95 : vector<16x384xbf16> to vector<16x384xf32>
    %97 = arith.addf %93, %96 : vector<16x384xf32>
    %cst_93 = arith.constant 0.000000e+00 : f32
    %98 = vector.broadcast %cst_93 : f32 to vector<16x384xf32>
    %99 = arith.cmpf ogt, %97, %98 : vector<16x384xf32>
    %cst_94 = arith.constant 2.000000e-01 : f32
    %100 = vector.broadcast %cst_94 : f32 to vector<16x384xf32>
    %101 = arith.mulf %100, %97 : vector<16x384xf32>
    %102 = arith.select %99, %97, %101 : vector<16x384xi1>, vector<16x384xf32>
    %c0_95 = arith.constant 0 : index
    %c0_96 = arith.constant 0 : index
    %c0_97 = arith.constant 0 : index
    %103 = vector.load %arg6[%c0_95, %c0_96, %c0_97] : memref<1x16x384xf32, #tpu.memory_space<vmem>>, vector<1x16x384xf32>
    %104 = vector.shape_cast %103 : vector<1x16x384xf32> to vector<16x384xf32>
    %105 = vector.shape_cast %102 : vector<16x384xf32> to vector<1x16x384xf32>
    tpu.vector_store %arg6[%c0_95, %c0_96, %c0_97], %105 {strides = array<i32>} : memref<1x16x384xf32, #tpu.memory_space<vmem>>, vector<1x16x384xf32>,
    return
  }
  func.func @transform_0(%arg0: i32) -> (i32, i32, i32) {
    %c0_i32 = arith.constant 0 : i32
    %c0_i32_0 = arith.constant 0 : i32
    %c0_i32_1 = arith.constant 0 : i32
    return %arg0, %c0_i32, %c0_i32_0 : i32, i32, i32
  }
  func.func @transform_1(%arg0: i32) -> (i32, i32) {
    %c0_i32 = arith.constant 0 : i32
    %c0_i32_0 = arith.constant 0 : i32
    %c0_i32_1 = arith.constant 0 : i32
    return %c0_i32, %c0_i32_0 : i32, i32
  }
  func.func @transform_2(%arg0: i32) -> (i32, i32) {
    %c0_i32 = arith.constant 0 : i32
    %c0_i32_0 = arith.constant 0 : i32
    %c0_i32_1 = arith.constant 0 : i32
    return %c0_i32, %c0_i32_0 : i32, i32
  }
  func.func @transform_3(%arg0: i32) -> (i32, i32) {
    %c0_i32 = arith.constant 0 : i32
    %c0_i32_0 = arith.constant 0 : i32
    %c0_i32_1 = arith.constant 0 : i32
    return %c0_i32, %c0_i32_0 : i32, i32
  }
  func.func @transform_4(%arg0: i32) -> (i32, i32) {
    %c0_i32 = arith.constant 0 : i32
    %c0_i32_0 = arith.constant 0 : i32
    %c0_i32_1 = arith.constant 0 : i32
    return %c0_i32, %c0_i32_0 : i32, i32
  }
  func.func @transform_5(%arg0: i32) -> (i32, i32, i32) {
    %c0_i32 = arith.constant 0 : i32
    %c0_i32_0 = arith.constant 0 : i32
    %c0_i32_1 = arith.constant 0 : i32
    return %arg0, %c0_i32, %c0_i32_0 : i32, i32, i32
  }
}

</mosaic_0001>

<bundles_post_ra>
// kernel: _lambda_.1
= control target key start
LH: loop header
LB: loop body
LE: loop exit
PB: predicated region body
PF: predicated region fallthrough
CT: control target
= control target key end

     0   :  { %s2098_s18 = smov 0   ;;  %s2508_s0 = inlined_call_operand.vmem [shape: bf16[4,16,422], index: 0, kind: input, shape index: {}]   ;;  %s2509_s1 = inlined_call_operand.vmem [shape: bf16[16,144], index: 1, kind: input, shape index: {}]   ;;  %s2510_s2 = inlined_call_operand.vmem [shape: f32[16,1], index: 2, kind: input, shape index: {}]   ;;  %s2511_s3 = inlined_call_operand.vmem [shape: bf16[16,144], index: 3, kind: input, shape index: {}]   ;;  %s2512_s4 = inlined_call_operand.vmem [shape: f32[16,1], index: 4, kind: input, shape index: {}]   ;;  %s2513_s5 = inlined_call_operand.vmem [shape: f32[4,16,384], index: 5, kind: output, shape index: {}]  }
   0x1 LB: > { %s1702_s19 = sadd.s32 4294967295, %s2056_s18   ;;  %p1706_p0 = scmp.ge.s32.totalorder %s2056_s18, 1  ;;  %s2056_s18 = sphi %s2098_s18, %s15_s18  }
   0x2   : > { %p187_p1 = scmp.lt.s32.totalorder %s2056_s18, 5 }
   0x4   : > { %p188_p2 = pnand %p1706_p0, %p187_p1 }
   0x5   : > { %p215_p3 = scmp.lt.s32.totalorder (!%p188_p2), %s1702_s19, 3  ;;  %s2058_s24 = smov (!%p188_p2), 91  }
   0x6   : > { %191 = sbr.rel (%p188_p2) target bundleno = 871 (0x367), region = 40  ;;  %s2059_s25 = smov (!%p188_p2), 92  }
   0x7   : > { %s2060_s26 = smov (!%p188_p2), 108   ;;  %s2061_s27 = smov (!%p188_p2), 109  }
   0x8   : > { %s2062_s28 = smov (!%p188_p2), 90   ;;  %s2063_s29 = smov (!%p188_p2), 110  }
   0x9   : > { %s2064_s30 = smov (!%p188_p2), 126   ;;  %s2065_s6 = smov (!%p188_p2), 127  }
   0xa   : > { %s2067_s21 = smov (!%p188_p2), 19  }
   0xb   : > { %s2553_s19 = smov (!%p215_p3, %s1702_s19), 3  ;;  %vm369_vm0 = vcmask 1043456   ;;  %vm546_vm1 = vcmask 752640   ;;  %vm511_vm2 = vcmask 883712   ;;  %vm581_vm3 = vcmask 744448  }
   0xc   : > { %s1950_s20 = sshll.u32 %s2553_s19, 5  ;;  %vm2516_vm4 = vcmask 736256   ;;  %vm2517_vm5 = vcmask 891904   ;;  %vm441_vm6 = vcmask 900096   ;;  %vm2515_vm7 = vcmask 1039360  }
   0xd   : > { %s2112_s23 = scalar_lea.vmem %s2508_s0, %s1950_s20  ;;  %vm2514_vm8 = vcmask 130048   ;;  %vm406_vm9 = vcmask 1031168  }
   0xe   : > { %v562_v0 = vld [vmem:[%s2112_s23 + $0x10] sm:$0xff]  ;;  %v560_v1 = vld [vmem:[%s2112_s23] sm:$0xff]  ;;  %v563_v2 = vld [vmem:[%s2112_s23 + $0x18] sm:$0xff] }
   0xf   : > { %572 = vrot.lane.b32.xlu1 %v562_v0, %s2058_s24  ;;  %568 = vrot.lane.b32.xlu0 %v560_v1, %s2058_s24  ;;  %345 = vst [vmem:[#allocation2] sm:$0xff] %v560_v1  ;;  %v561_v3 = vld [vmem:[%s2112_s23 + $0x8] sm:$0xff] }
  0x10   : > { %533 = vrot.lane.b32.xlu2 %v560_v1, %s2059_s25  ;;  %347 = vst [vmem:[#allocation2 + $0xc] sm:$0xff] %v562_v0 }
  0x17   : > { %574 = vrot.lane.b32.xlu1 %v563_v2, %s2058_s24  ;;  %570 = vrot.lane.b32.xlu0 %v561_v3, %s2058_s24 }
  0x18   : > { %535 = vrot.lane.b32.xlu2 %v561_v3, %s2059_s25 }
  0x1f   : > { %539 = vrot.lane.b32.xlu1 %v563_v2, %s2059_s25  ;;  %537 = vrot.lane.b32.xlu0 %v562_v0, %s2059_s25 }
  0x20   : > { %498 = vrot.lane.b32.xlu2 %v560_v1, %s2060_s26 }
  0x27   : > { %502 = vrot.lane.b32.xlu1 %v562_v0, %s2060_s26  ;;  %500 = vrot.lane.b32.xlu0 %v561_v3, %s2060_s26 }
  0x28   : > { %504 = vrot.lane.b32.xlu2 %v563_v2, %s2060_s26 }
  0x2f   : > { %465 = vrot.lane.b32.xlu1 %v561_v3, %s2061_s27  ;;  %463 = vrot.lane.b32.xlu0 %v560_v1, %s2061_s27 }
  0x30   : > { %467 = vrot.lane.b32.xlu2 %v562_v0, %s2061_s27 }
  0x37   : > { %603 = vrot.lane.b32.xlu1 %v560_v1, %s2062_s28  ;;  %469 = vrot.lane.b32.xlu0 %v563_v2, %s2061_s27 }
  0x38   : > { %605 = vrot.lane.b32.xlu2 %v561_v3, %s2062_s28 }
  0x3f   : > { %609 = vrot.lane.b32.xlu1 %v563_v2, %s2062_s28  ;;  %607 = vrot.lane.b32.xlu0 %v562_v0, %s2062_s28 }
  0x40   : > { %428 = vrot.lane.b32.xlu2 %v560_v1, %s2063_s29 }
  0x47   : > { %432 = vrot.lane.b32.xlu1 %v562_v0, %s2063_s29  ;;  %430 = vrot.lane.b32.xlu0 %v561_v3, %s2063_s29 }
  0x48   : > { %434 = vrot.lane.b32.xlu2 %v563_v2, %s2063_s29 }
  0x4f   : > { %395 = vrot.lane.b32.xlu1 %v561_v3, %s2064_s30  ;;  %393 = vrot.lane.b32.xlu0 %v560_v1, %s2064_s30 }
  0x50   : > { %397 = vrot.lane.b32.xlu2 %v562_v0, %s2064_s30 }
  0x57   : > { %399 = vrot.lane.b32.xlu0 %v563_v2, %s2064_s30  ;;  %357 = vrot.lane.b32.xlu1 %v560_v1, %s2065_s6 }
  0x58   : > { %359 = vrot.lane.b32.xlu2 %v561_v3, %s2065_s6 }
  0x5f   : > { %361 = vrot.lane.b32.xlu0 %v562_v0, %s2065_s6  ;;  %363 = vrot.lane.b32.xlu1 %v563_v2, %s2065_s6 }
  0x6a   : > { %v534_v4 = vpop.permute.xlu2 %533 }
  0x6b   : > { %v541_v5 = vrot.slane %v534_v4, 4 }
  0x72   : > { %v536_v6 = vpop.permute.xlu2 %535 }
  0x73   : > { %v542_v7 = vrot.slane %v536_v6, 4 }
  0x75   : > { %v545_v8 = vsel %vm369_vm0, %v541_v5, %v542_v7  ;;  %v548_v9 = vsel %vm546_vm1, %v536_v6, %v542_v7 }
  0x76   : > { %v547_v10 = vsel %vm546_vm1, %v534_v4, %v545_v8  ;;  %557 = vst [vmem:[#allocation2 + $0x98] sm:$0xf] %v548_v9 }
  0x77   : > { %556 = vst [vmem:[#allocation2 + $0x90] sm:$0xff] %v547_v10 }
  0x7a   : > { %v499_v11 = vpop.permute.xlu2 %498 }
  0x7b   : > { %v506_v46 = vrot.slane %v499_v11, 4 }
  0x7e   : > { %v1792_v55 = vld [vmem:[#allocation2 + $0x90] sm:$0xf]  ;;  %v1971_v56 = vld [vmem:[#allocation2 + $0x94] sm:$0xf] }
  0x81   : > { %v573_v12 = vpop.permute.xlu1 %572  ;;  %v569_v13 = vpop.permute.xlu0 %568 }
  0x82   : > { %v505_v14 = vpop.permute.xlu2 %504  ;;  %v578_v19 = vrot.slane %v573_v12, 4  ;;  %v576_v20 = vrot.slane %v569_v13, 4 }
  0x83   : > { %v509_v15 = vrot.slane %v505_v14, 4 }
  0x85   : > { %v516_v16 = vsel %vm511_vm2, %v505_v14, %v509_v15 }
  0x86   : > { %524 = vst [vmem:[#allocation2 + $0x8c] sm:$0xf] %v516_v16 }
  0x89   : > { %v575_v17 = vpop.permute.xlu1 %574  ;;  %v571_v18 = vpop.permute.xlu0 %570 }
  0x8a   : > { %v579_v21 = vrot.slane %v575_v17, 4  ;;  %v577_v22 = vrot.slane %v571_v18, 4  ;;  %v2154_v23 = vpop.permute.xlu2 %467 }
  0x8c   : > { %v584_v24 = vsel %vm369_vm0, %v578_v19, %v579_v21  ;;  %v586_v25 = vsel %vm581_vm3, %v575_v17, %v579_v21  ;;  %v580_v26 = vsel %vm369_vm0, %v576_v20, %v577_v22  ;;  %v583_v29 = vsel %vm581_vm3, %v571_v18, %v577_v22 }
  0x8d   : > { %v585_v27 = vsel %vm581_vm3, %v573_v12, %v584_v24  ;;  %594 = vst [vmem:[#allocation2 + $0xbc] sm:$0xf] %v586_v25  ;;  %v582_v28 = vsel %vm581_vm3, %v569_v13, %v580_v26 }
  0x8e   : > { %593 = vst [vmem:[#allocation2 + $0xb4] sm:$0xff] %v585_v27 }
  0x8f   : > { %591 = vst [vmem:[#allocation2 + $0xa8] sm:$0xff] %v582_v28 }
  0x90   : > { %592 = vst [vmem:[#allocation2 + $0xb0] sm:$0xf] %v583_v29 }
  0x91   : > { %v540_v30 = vpop.permute.xlu1 %539  ;;  %v538_v31 = vpop.permute.xlu0 %537 }
  0x92   : > { %v544_v32 = vrot.slane %v540_v30, 4  ;;  %v543_v33 = vrot.slane %v538_v31, 4  ;;  %v2162_v34 = vpop.permute.xlu2 %605 }
  0x93   : > { %v612_v35 = vrot.slane %v2162_v34, 4 }
  0x94   : > { %v551_v36 = vsel %vm546_vm1, %v540_v30, %v544_v32  ;;  %v549_v37 = vsel %vm369_vm0, %v543_v33, %v544_v32 }
  0x95   : > { %559 = vst [vmem:[#allocation2 + $0xa4] sm:$0xf] %v551_v36  ;;  %v550_v38 = vsel %vm546_vm1, %v538_v31, %v549_v37  ;;  %v1975_v39 = vld [vmem:[#allocation2 + $0xb0] sm:$0xf0]  ;;  %v1806_v40 = vld [vmem:[#allocation2 + $0xb4] sm:$0xf0]  ;;  %v618_v41 = vsel %vm2516_vm4, %v2162_v34, %v612_v35 }
  0x96   : > { %558 = vst [vmem:[#allocation2 + $0x9c] sm:$0xff] %v550_v38  ;;  %v1804_v42 = vld [vmem:[#allocation2 + $0xa8] sm:$0xf]  ;;  %v1974_v43 = vld [vmem:[#allocation2 + $0xac] sm:$0xf] }
  0x97   : > { %v1805_v44 = vor.u32 %v1975_v39, %v1804_v42  ;;  %v1809_v45 = vor.u32 %v1974_v43, %v1806_v40  ;;  %627 = vst [vmem:[#allocation2 + $0xc8] sm:$0xf] %v618_v41 }
  0x99   : > { %837 = vmatpush.bf16.msra.mxu0 %v1805_v44  ;;  %865 = vmatpush.bf16.msra.mxu2 %v1809_v45  ;;  %v503_v47 = vpop.permute.xlu1 %502  ;;  %v501_v48 = vpop.permute.xlu0 %500 }
  0x9a   : > { %v508_v49 = vrot.slane %v503_v47, 4  ;;  %v507_v50 = vrot.slane %v501_v48, 4  ;;  %v2172_v51 = vpop.permute.xlu2 %428 }
  0x9b   : > { %v436_v42 = vrot.slane %v2172_v51, 4 }
  0x9c   : > { %v510_v52 = vsel %vm369_vm0, %v506_v46, %v507_v50  ;;  %v513_v53 = vsel %vm511_vm2, %v501_v48, %v507_v50  ;;  %v514_v54 = vsel %vm369_vm0, %v508_v49, %v509_v15  ;;  %v473_v15 = vrot.slane %v2154_v23, 4  ;;  %v1812_v50 = vld [vmem:[#allocation2 + $0xb0] sm:$0xf] }
  0x9d   : > { %v512_v57 = vsel %vm511_vm2, %v499_v11, %v510_v52  ;;  %522 = vst [vmem:[#allocation2 + $0x80] sm:$0xf] %v513_v53  ;;  %v515_v58 = vsel %vm511_vm2, %v503_v47, %v514_v54  ;;  %v1972_v59 = vld [vmem:[#allocation2 + $0x98] sm:$0xf0]  ;;  %v1794_v60 = vld [vmem:[#allocation2 + $0x9c] sm:$0xf0] }
  0x9e   : > { %521 = vst [vmem:[#allocation2 + $0x78] sm:$0xff] %v512_v57  ;;  %v1793_v61 = vor.u32 %v1972_v59, %v1792_v55  ;;  %v1797_v62 = vor.u32 %v1971_v56, %v1794_v60  ;;  %v1976_v47 = vld [vmem:[#allocation2 + $0xb8] sm:$0xf0]  ;;  %v1951_v56 = vld [vmem:[%s2509_s1 + $0x4] sm:$0xf] }
  0x9f   : > { %523 = vst [vmem:[#allocation2 + $0x84] sm:$0xff] %v515_v58  ;;  %v1714_v57 = vld [vmem:[%s2509_s1 + $0x8] sm:$0xf0] }
  0xa0   : > { %838 = vmatpush.bf16.msra.mxu0 %v1793_v61  ;;  %866 = vmatpush.bf16.msra.mxu2 %v1797_v62 }
  0xa1   : > { %v466_v63 = vpop.permute.xlu1 %465  ;;  %v464_v0 = vpop.permute.xlu0 %463 }
  0xa2   : > { %v472_v1 = vrot.slane %v466_v63, 4  ;;  %v471_v2 = vrot.slane %v464_v0, 4  ;;  %v2179_v3 = vpop.permute.xlu2 %434 }
  0xa3   : > { %v439_v4 = vrot.slane %v2179_v3, 4 }
  0xa4   : > { %v478_v5 = vsel %vm2517_vm5, %v466_v63, %v472_v1  ;;  %v475_v6 = vsel %vm369_vm0, %v471_v2, %v472_v1  ;;  %v1813_v1 = vor.u32 %v1976_v47, %v1812_v50 }
  0xa5   : > { %487 = vst [vmem:[#allocation2 + $0x68] sm:$0xf] %v478_v5  ;;  %v477_v7 = vsel %vm2517_vm5, %v464_v0, %v475_v6  ;;  %v1780_v8 = vld [vmem:[#allocation2 + $0x78] sm:$0xf]  ;;  %v1968_v9 = vld [vmem:[#allocation2 + $0x7c] sm:$0xf]  ;;  %v446_v10 = vsel %vm441_vm6, %v2179_v3, %v439_v4  ;;  %v2225_v3 = vor.u32 %v1951_v56, %v1714_v57 }
  0xa6   : > { %486 = vst [vmem:[#allocation2 + $0x60] sm:$0xff] %v477_v7  ;;  %v1969_v11 = vld [vmem:[#allocation2 + $0x80] sm:$0xf0]  ;;  %v1782_v12 = vld [vmem:[#allocation2 + $0x84] sm:$0xf0] }
  0xa7   : > { %v1781_v13 = vor.u32 %v1969_v11, %v1780_v8  ;;  %v1785_v14 = vor.u32 %v1968_v9, %v1782_v12  ;;  %454 = vst [vmem:[#allocation2 + $0x5c] sm:$0xf] %v446_v10  ;;  %v1824_v0 = vld [vmem:[#allocation2 + $0xc8] sm:$0xf]  ;;  %v344_v7 = vld [vmem:[%s2112_s23 + $0x18] sm:$0xf] }
  0xa8   : > { %v1800_v10 = vld [vmem:[#allocation2 + $0x98] sm:$0xf]  ;;  %348 = vst [vmem:[#allocation2 + $0x14] sm:$0xf] %v344_v7 }
  0xa9   : > { %839 = vmatpush.bf16.msra.mxu0 %v1781_v13  ;;  %867 = vmatpush.bf16.msra.mxu2 %v1785_v14  ;;  %v604_v16 = vpop.permute.xlu1 %603  ;;  %v470_v17 = vpop.permute.xlu0 %469  ;;  %v1788_v14 = vld [vmem:[#allocation2 + $0x80] sm:$0xf] }
  0xaa   : > { %v611_v18 = vrot.slane %v604_v16, 4  ;;  %v474_v19 = vrot.slane %v470_v17, 4  ;;  %v2190_v20 = vpop.permute.xlu2 %397 }
  0xac   : > { %v615_v21 = vsel %vm369_vm0, %v611_v18, %v612_v35  ;;  %v479_v22 = vsel %vm369_vm0, %v473_v15, %v474_v19  ;;  %v481_v24 = vsel %vm2517_vm5, %v470_v17, %v474_v19  ;;  %v1970_v15 = vld [vmem:[#allocation2 + $0x88] sm:$0xf0] }
  0xad   : > { %v617_v25 = vsel %vm2516_vm4, %v604_v16, %v615_v21  ;;  %v480_v26 = vsel %vm2517_vm5, %v2154_v23, %v479_v22  ;;  %489 = vst [vmem:[#allocation2 + $0x74] sm:$0xf] %v481_v24  ;;  %v1768_v23 = vld [vmem:[#allocation2 + $0x60] sm:$0xf]  ;;  %v1965_v36 = vld [vmem:[#allocation2 + $0x64] sm:$0xf] }
  0xae   : > { %626 = vst [vmem:[#allocation2 + $0xc0] sm:$0xff] %v617_v25  ;;  %v669_v25 = vld [vmem:[%s2510_s2 + $0x8] sm:$0xff] }
  0xaf   : > { %488 = vst [vmem:[#allocation2 + $0x6c] sm:$0xff] %v480_v26  ;;  %v403_v26 = vrot.slane %v2190_v20, 4 }
  0xb1   : > { %v610_v27 = vpop.permute.xlu1 %609  ;;  %v608_v28 = vpop.permute.xlu0 %607 }
  0xb2   : > { %v614_v29 = vrot.slane %v610_v27, 4  ;;  %v613_v30 = vrot.slane %v608_v28, 4  ;;  %v2200_v31 = vpop.permute.xlu2 %359 }
  0xb3   : > { %v366_v32 = vrot.slane %v2200_v31, 4 }
  0xb4   : > { %v621_v33 = vsel %vm2516_vm4, %v610_v27, %v614_v29  ;;  %v619_v34 = vsel %vm369_vm0, %v613_v30, %v614_v29  ;;  %v1789_v27 = vor.u32 %v1970_v15, %v1788_v14  ;;  %v668_v29 = vld [vmem:[%s2510_s2] sm:$0xff]  ;;  %v1952_v14 = vld [vmem:[%s2509_s1 + $0x4] sm:$0xf0] }
  0xb5   : > { %629 = vst [vmem:[#allocation2 + $0xd4] sm:$0xf] %v621_v33  ;;  %v620_v35 = vsel %vm2516_vm4, %v608_v28, %v619_v34  ;;  %v373_v37 = vsel %vm2515_vm7, %v2200_v31, %v366_v32  ;;  %v1816_v48 = vld [vmem:[#allocation2 + $0xc0] sm:$0xf]  ;;  %v1977_v49 = vld [vmem:[#allocation2 + $0xc4] sm:$0xf] }
  0xb6   : > { %628 = vst [vmem:[#allocation2 + $0xcc] sm:$0xff] %v620_v35  ;;  %v1966_v38 = vld [vmem:[#allocation2 + $0x68] sm:$0xf0]  ;;  %v1770_v39 = vld [vmem:[#allocation2 + $0x6c] sm:$0xf0]  ;;  %v2066_v28 = vmov 0  }
  0xb7   : > { %v1769_v40 = vor.u32 %v1966_v38, %v1768_v23  ;;  %v1773_v41 = vor.u32 %v1965_v36, %v1770_v39  ;;  %382 = vst [vmem:[#allocation2 + $0x20] sm:$0xf] %v373_v37  ;;  %2029 = vset.pattern.permute.xlu0 %v2066_v28  ;;  %2028 = vset.pattern.permute.xlu2 %v2066_v28  ;;  %v1967_v34 = vld [vmem:[#allocation2 + $0x70] sm:$0xf0]  ;;  %v1776_v36 = vld [vmem:[#allocation2 + $0x68] sm:$0xf] }
  0xb8   : > { %677 = vperm.xlu0 %2029, %v669_v25   ;;  %672 = vperm.xlu2 %2028, %v668_v29  }
  0xb9   : > { %840 = vmatpush.bf16.msra.mxu0 %v1769_v40  ;;  %868 = vmatpush.bf16.msra.mxu2 %v1773_v41  ;;  %v433_v43 = vpop.permute.xlu1 %432  ;;  %v431_v44 = vpop.permute.xlu0 %430  ;;  %v1777_v40 = vor.u32 %v1967_v34, %v1776_v36 }
  0xba   : > { %v438_v45 = vrot.slane %v433_v43, 4  ;;  %v437_v46 = vrot.slane %v431_v44, 4 }
  0xbc   : > { %v440_v52 = vsel %vm369_vm0, %v436_v42, %v437_v46  ;;  %v443_v53 = vsel %vm441_vm6, %v431_v44, %v437_v46  ;;  %v444_v54 = vsel %vm369_vm0, %v438_v45, %v439_v4  ;;  %v1979_v55 = vld [vmem:[#allocation2 + $0xd0] sm:$0xf0]  ;;  %v1973_v4 = vld [vmem:[#allocation2 + $0xa0] sm:$0xf0]  ;;  %v1964_v44 = vld [vmem:[#allocation2 + $0x58] sm:$0xf0] }
  0xbd   : > { %v442_v58 = vsel %vm441_vm6, %v2172_v51, %v440_v52  ;;  %452 = vst [vmem:[#allocation2 + $0x50] sm:$0xf] %v443_v53  ;;  %v445_v59 = vsel %vm441_vm6, %v433_v43, %v444_v54  ;;  %v1978_v60 = vld [vmem:[#allocation2 + $0xc8] sm:$0xf0]  ;;  %v1818_v61 = vld [vmem:[#allocation2 + $0xcc] sm:$0xf0]  ;;  %v1825_v2 = vor.u32 %v1979_v55, %v1824_v0  ;;  %v1801_v11 = vor.u32 %v1973_v4, %v1800_v10 }
  0xbe   : > { %451 = vst [vmem:[#allocation2 + $0x48] sm:$0xff] %v442_v58  ;;  %v1817_v62 = vor.u32 %v1978_v60, %v1816_v48  ;;  %v1821_v63 = vor.u32 %v1977_v49, %v1818_v61  ;;  %v342_v51 = vld [vmem:[%s2112_s23 + $0x8] sm:$0xf]  ;;  %v1740_v60 = vld [vmem:[#allocation2 + $0x20] sm:$0xf] }
  0xbf   : > { %453 = vst [vmem:[#allocation2 + $0x54] sm:$0xff] %v445_v59  ;;  %v1720_v61 = vld [vmem:[#allocation2] sm:$0xf]  ;;  %v1722_v0 = vld [vmem:[#allocation2 + $0xc] sm:$0xf0] }
  0xc0   : > { %858 = vmatpush.bf16.msra.mxu1 %v1817_v62  ;;  %886 = vmatpush.bf16.msra.mxu3 %v1821_v63  ;;  %346 = vst [vmem:[#allocation2 + $0x8] sm:$0xf] %v342_v51  ;;  %v1954_v62 = vld [vmem:[#allocation2 + $0x8] sm:$0xf0]  ;;  %v1953_v63 = vld [vmem:[#allocation2 + $0x4] sm:$0xf] }
  0xc1   : > { %v396_v5 = vpop.permute.xlu1 %395  ;;  %v394_v6 = vpop.permute.xlu0 %393  ;;  %v1955_v4 = vld [vmem:[#allocation2 + $0x10] sm:$0xf0] }
  0xc2   : > { %v402_v8 = vrot.slane %v396_v5, 4  ;;  %v401_v9 = vrot.slane %v394_v6, 4 }
  0xc3   : > { %1827 = vmatmul.msk.bf16.vlgmr.msra.gmra.mxu3 %vm2514_vm8, %v2225_v3  ;;  %1826 = vmatmul.msk.bf16.vlgmr.msra.gmra.mxu1 %vm2514_vm8, %v2225_v3 }
  0xc4   : > { %893 = vmatpush.bf16.msrb.mxu1 %v1813_v1  ;;  %914 = vmatpush.bf16.msrb.mxu3 %v1825_v2  ;;  %v408_v12 = vsel %vm406_vm9, %v396_v5, %v402_v8  ;;  %v405_v13 = vsel %vm369_vm0, %v401_v9, %v402_v8  ;;  %v1764_v43 = vld [vmem:[#allocation2 + $0x50] sm:$0xf] }
  0xc5   : > { %417 = vst [vmem:[#allocation2 + $0x38] sm:$0xf] %v408_v12  ;;  %v407_v16 = vsel %vm406_vm9, %v394_v6, %v405_v13  ;;  %v1756_v17 = vld [vmem:[#allocation2 + $0x48] sm:$0xf]  ;;  %v1962_v18 = vld [vmem:[#allocation2 + $0x4c] sm:$0xf]  ;;  %v1765_v45 = vor.u32 %v1964_v44, %v1764_v43  ;;  %v1725_v12 = vor.u32 %v1953_v63, %v1722_v0 }
  0xc6   : > { %416 = vst [vmem:[#allocation2 + $0x30] sm:$0xff] %v407_v16  ;;  %v1963_v19 = vld [vmem:[#allocation2 + $0x50] sm:$0xf0]  ;;  %v1758_v21 = vld [vmem:[#allocation2 + $0x54] sm:$0xf0]  ;;  %v226_v16 = vlaneseq }
  0xc7   : > { %v1757_v22 = vor.u32 %v1963_v19, %v1756_v17  ;;  %v1761_v24 = vor.u32 %v1962_v18, %v1758_v21  ;;  %v1728_v1 = vld [vmem:[#allocation2 + $0x8] sm:$0xf]  ;;  %v1712_v13 = vld [vmem:[%s2509_s1] sm:$0xf] }
  0xc8   : > { %894 = vmatpush.bf16.msrb.mxu1 %v1801_v11  ;;  %v1729_v10 = vor.u32 %v1955_v4, %v1728_v1  ;;  %v1721_v11 = vor.u32 %v1954_v62, %v1720_v61  ;;  %v1713_v15 = vor.u32 %v1952_v14, %v1712_v13  ;;  %v2264_v17 = vand.u32 127, %v226_v16 }
  0xc9   : > { %841 = vmatpush.bf16.msra.mxu0 %v1757_v22  ;;  %869 = vmatpush.bf16.msra.mxu2 %v1761_v24  ;;  %v400_v30 = vpop.permute.xlu0 %399  ;;  %v358_v33 = vpop.permute.xlu1 %357 }
  0xca   : > { %v404_v35 = vrot.slane %v400_v30, 4  ;;  %v365_v23 = vrot.slane %v358_v33, 4  ;;  %v2267_v18 = vadd.s32 256, %v2264_v17  ;;  %v2271_v21 = vadd.s32 128, %v2264_v17 }
  0xcb   : > { %v233_v22 = vand.u32 65535, %v2264_v17 }
  0xcc   : > { %895 = vmatpush.bf16.msrb.mxu1 %v1789_v27  ;;  %v409_v37 = vsel %vm369_vm0, %v403_v26, %v404_v35  ;;  %v411_v38 = vsel %vm406_vm9, %v400_v30, %v404_v35  ;;  %v370_v39 = vsel %vm369_vm0, %v365_v23, %v366_v32  ;;  %v1752_v49 = vld [vmem:[#allocation2 + $0x38] sm:$0xf]  ;;  %v291_v19 = vand.u32 65535, %v2267_v18 }
  0xcd   : > { %v410_v41 = vsel %vm406_vm9, %v2190_v20, %v409_v37  ;;  %419 = vst [vmem:[#allocation2 + $0x44] sm:$0xf] %v411_v38  ;;  %v372_v42 = vsel %vm2515_vm7, %v358_v33, %v370_v39  ;;  %v1744_v52 = vld [vmem:[#allocation2 + $0x30] sm:$0xf]  ;;  %v1959_v53 = vld [vmem:[#allocation2 + $0x34] sm:$0xf] }
  0xce   : > { %418 = vst [vmem:[#allocation2 + $0x3c] sm:$0xff] %v410_v41  ;;  %v292_v24 = vshrl.u32 %v2267_v18, 16  ;;  %v295_v25 = vmul.u32 58254, %v291_v19  ;;  %v234_v26 = vshrl.u32 %v2264_v17, 16  ;;  %v237_v27 = vmul.u32 58254, %v233_v22 }
  0xcf   : > { %381 = vst [vmem:[#allocation2 + $0x18] sm:$0xff] %v372_v42  ;;  %v294_v29 = vmul.u32 14564, %v291_v19  ;;  %v262_v34 = vand.u32 65535, %v2271_v21  ;;  %v236_v35 = vmul.u32 14564, %v233_v22  ;;  %v263_v37 = vshrl.u32 %v2271_v21, 16 }
  0xd0   : > { %896 = vmatpush.bf16.msrb.mxu1 %v1777_v40  ;;  %v296_v30 = vmul.u32 14564, %v292_v24  ;;  %v298_v33 = vshll.u32 %v295_v25, 16  ;;  %v238_v23 = vmul.u32 14564, %v234_v26  ;;  %v240_v36 = vshll.u32 %v237_v27, 16 }
  0xd1   : > { %v362_v46 = vpop.permute.xlu0 %361  ;;  %v364_v47 = vpop.permute.xlu1 %363  ;;  %v297_v38 = vmul.u32 58254, %v292_v24  ;;  %v241_v63 = vshrl.u32 %v237_v27, 16 }
  0xd2   : > { %v367_v48 = vrot.slane %v362_v46, 4  ;;  %v368_v31 = vrot.slane %v364_v47, 4  ;;  %v300_v39 = vshll.u32 %v296_v30, 16  ;;  %vm302_vm10 = vc.u32 %v294_v29, %v298_v33 }
  0xd3   : > { %1828 = vmatmul.msk.bf16.vlgmr.msrb.gmra.mxu3 %vm2514_vm8, %v2225_v3  ;;  %v304_v40 = vadd.s32 %v298_v33, %v294_v29  ;;  %v303_v41 = vsel %vm302_vm10, 1, %v2066_v28  ;;  %v242_v43 = vshll.u32 %v238_v23, 16  ;;  %vm244_vm12 = vc.u32 %v236_v35, %v240_v36 }
  0xd4   : > { %897 = vmatpush.bf16.msrb.mxu1 %v1765_v45  ;;  %v374_v20 = vsel %vm369_vm0, %v367_v48, %v368_v31  ;;  %v376_v32 = vsel %vm2515_vm7, %v364_v47, %v368_v31  ;;  %v1961_v50 = vld [vmem:[#allocation2 + $0x40] sm:$0xf0]  ;;  %v305_v42 = vadd.s32 %v303_v41, %v297_v38  ;;  %v246_v45 = vadd.s32 %v240_v36, %v236_v35 }
  0xd5   : > { %v375_v54 = vsel %vm2515_vm7, %v362_v46, %v374_v20  ;;  %384 = vst [vmem:[#allocation2 + $0x2c] sm:$0xf] %v376_v32  ;;  %v1753_v55 = vor.u32 %v1961_v50, %v1752_v49  ;;  %v1960_v56 = vld [vmem:[#allocation2 + $0x38] sm:$0xf0]  ;;  %v1746_v57 = vld [vmem:[#allocation2 + $0x3c] sm:$0xf0]  ;;  %vm306_vm11 = vc.u32 %v304_v40, %v300_v39 }
  0xd6   : > { %383 = vst [vmem:[#allocation2 + $0x24] sm:$0xff] %v375_v54  ;;  %v1745_v58 = vor.u32 %v1960_v56, %v1744_v52  ;;  %v1749_v59 = vor.u32 %v1959_v53, %v1746_v57  ;;  %v1732_v3 = vld [vmem:[#allocation2 + $0x18] sm:$0xf]  ;;  %v1956_v6 = vld [vmem:[#allocation2 + $0x1c] sm:$0xf]  ;;  %v307_v44 = vsel %vm306_vm11, 1, %v2066_v28  ;;  %vm248_vm13 = vc.u32 %v246_v45, %v242_v43 }
  0xd7   : > { %v265_v46 = vmul.u32 14564, %v262_v34  ;;  %v266_v47 = vmul.u32 58254, %v262_v34  ;;  %v267_v48 = vmul.u32 14564, %v263_v37  ;;  %v299_v31 = vshrl.u32 %v295_v25, 16 }
  0xd8   : > { %898 = vmatpush.bf16.msrb.mxu1 %v1753_v55  ;;  %842 = vmatpush.bf16.msra.mxu0 %v1745_v58  ;;  %v309_v49 = vadd.s32 %v307_v44, %v305_v42  ;;  %v239_v20 = vmul.u32 58254, %v234_v26  ;;  %v245_v50 = vsel %vm244_vm12, 1, %v2066_v28  ;;  %v268_v53 = vmul.u32 58254, %v263_v37 }
  0xd9   : > { %870 = vmatpush.bf16.msra.mxu2 %v1749_v59  ;;  %v269_v32 = vshll.u32 %v266_v47, 16  ;;  %v271_v52 = vshll.u32 %v267_v48, 16  ;;  %v301_v56 = vshrl.u32 %v296_v30, 16  ;;  %v249_v59 = vsel %vm248_vm13, 1, %v2066_v28 }
  0xda   : > { %v310_v57 = vadd.s32 %v309_v49, %v299_v31  ;;  %v247_v58 = vadd.s32 %v245_v50, %v239_v20  ;;  %v270_v1 = vshrl.u32 %v266_v47, 16  ;;  %vm337_vm8 = vcmp.lt.s32.totalorder %v2267_v18, 286 }
  0xdb   : > { %vm273_vm14 = vc.u32 %v265_v46, %v269_v32  ;;  %v275_v54 = vadd.s32 %v269_v32, %v265_v46 }
  0xdc   : > { %v1958_v2 = vld [vmem:[#allocation2 + $0x28] sm:$0xf0]  ;;  %v274_v55 = vsel %vm273_vm14, 1, %v2066_v28  ;;  %v311_v62 = vadd.s32 %v310_v57, %v301_v56  ;;  %v251_v0 = vadd.s32 %v249_v59, %v247_v58 }
  0xdd   : > { %v1741_v51 = vor.u32 %v1958_v2, %v1740_v60  ;;  %v1957_v5 = vld [vmem:[#allocation2 + $0x20] sm:$0xf0]  ;;  %v1734_v7 = vld [vmem:[#allocation2 + $0x24] sm:$0xf0]  ;;  %vm277_vm15 = vc.u32 %v275_v54, %v271_v52  ;;  %v276_v60 = vadd.s32 %v274_v55, %v268_v53 }
  0xde   : > { %v1733_v8 = vor.u32 %v1957_v5, %v1732_v3  ;;  %v1737_v9 = vor.u32 %v1956_v6, %v1734_v7  ;;  %v278_v61 = vsel %vm277_vm15, 1, %v2066_v28  ;;  %v243_v5 = vshrl.u32 %v238_v23, 16 }
  0xdf   : > { %899 = vmatpush.bf16.msrb.mxu1 %v1741_v51  ;;  %v280_v2 = vadd.s32 %v278_v61, %v276_v60  ;;  %v312_v51 = vshrl.u32 %v311_v62, 4  ;;  %v252_v6 = vadd.s32 %v251_v0, %v241_v63  ;;  %v272_v7 = vshrl.u32 %v267_v48, 16 }
  0xe0   : > { %843 = vmatpush.bf16.msra.mxu0 %v1733_v8  ;;  %871 = vmatpush.bf16.msra.mxu2 %v1737_v9 }
  0xe1   : > { %v281_v8 = vadd.s32 %v280_v2, %v270_v1  ;;  %v313_v9 = vmul.u32 18, %v312_v51 }
  0xe3   : > { %900 = vmatpush.bf16.msrb.mxu1 %v1729_v10  ;;  %v253_v10 = vadd.s32 %v252_v6, %v243_v5 }
  0xe4   : > { %844 = vmatpush.bf16.msra.mxu0 %v1721_v11  ;;  %872 = vmatpush.bf16.msra.mxu2 %v1725_v12  ;;  %v282_v11 = vadd.s32 %v281_v8, %v272_v7  ;;  %v314_v12 = vsub.s32 %v2267_v18, %v313_v9 }
  0xe5   : > { %v254_v13 = vshrl.u32 %v253_v10, 4 }
  0xe6   : > { %901 = vmatmul.bf16.vlgmr.msrb.gmra.mxu1 %v1713_v15  ;;  %v283_v16 = vshrl.u32 %v282_v11, 4  ;;  %vm319_vm10 = vcmp.ne.s32.totalorder %v314_v12, 0  ;;  %vm322_vm11 = vcmp.lt.s32.totalorder %v314_v12, 0  ;;  %v328_v22 = vadd.s32 18, %v314_v12 }
  0xe7   : > { %845 = vmatmul.bf16.vlgmr.msra.gmra.mxu0 %v1713_v15  ;;  %873 = vmatmul.bf16.vlgmr.msra.gmra.mxu2 %v1713_v15  ;;  %v255_v19 = vmul.u32 18, %v254_v13  ;;  %vm325_vm12 = vmand %vm322_vm11, %vm319_vm10 }
  0xe8   : > { %v284_v24 = vmul.u32 18, %v283_v16  ;;  %v331_v27 = vsel %vm325_vm12, %v328_v22, %v314_v12 }
  0xe9   : > { %v256_v25 = vsub.s32 %v2264_v17, %v255_v19  ;;  %vm334_vm15 = vcmp.lt.s32.totalorder %v331_v27, 16 }
  0xea   : > { %v285_v29 = vsub.s32 %v2271_v21, %v284_v24  ;;  %vm2294_vm11 = vmand %vm334_vm15, %vm337_vm8 }
  0xeb   : > { %vm317_vm13 = vcmp.ne.s32.totalorder %v256_v25, 0  ;;  %vm320_vm14 = vcmp.lt.s32.totalorder %v256_v25, 0  ;;  %v326_v17 = vadd.s32 18, %v256_v25 }
  0xec   : > { %vm318_vm7 = vcmp.ne.s32.totalorder %v285_v29, 0  ;;  %vm321_vm4 = vcmp.lt.s32.totalorder %v285_v29, 0  ;;  %vm2290_vm10 = vmand %vm320_vm14, %vm317_vm13  ;;  %v327_v39 = vadd.s32 18, %v285_v29 }
  0xed   : > { %vm2298_vm5 = vmand %vm321_vm4, %vm318_vm7  ;;  %v329_v44 = vsel %vm2290_vm10, %v326_v17, %v256_v25  ;;  %vm939_vm10 = vcmask 150528  }
  0xee   : > { %v330_v48 = vsel %vm2298_vm5, %v327_v39, %v285_v29  ;;  %vm2309_vm7 = vcmp.lt.s32.totalorder %v329_v44, 16  ;;  %940 = vst.msk [vmem:[#allocation3] sm:$0xf] %vm939_vm10, %v2066_v28  ;;  %v1316_v39 = vld [vmem:[%s2512_s4] sm:$0xff] }
  0xef   : > { %vm2313_vm8 = vcmp.lt.s32.totalorder %v330_v48, 16  ;;  %941 = vst.msk [vmem:[#allocation3 + $0x10] sm:$0xf] %vm939_vm10, %v2066_v28 }
 0x112   : > { %v673_v26 = vpop.permute.xlu2 %672 }
 0x12a   : > { %v678_v43 = vpop.permute.xlu0 %677 }
 0x140   : > { %v860_v3 = vpop.f32.mrf.mxu1 }
 0x146   : > { %v888_v4 = vpop.f32.mrf.mxu3 }
 0x148   : > { %v862_v14 = vpop.f32.mrf.mxu1 }
 0x14e   : > { %v2285_v15 = vpop.f32.mrf.mxu3 }
 0x156   : > { %v916_v33 = vpop.f32.mrf.mxu3 }
 0x15e   : > { %v918_v49 = vpop.f32.mrf.mxu3 }
 0x163   : > { %v902_v30 = vpop.f32.mrf.mxu1 }
 0x164   : > { %v846_v34 = vpop.f32.mrf.mxu0  ;;  %v903_v35 = vadd.f32 %v902_v30, %v673_v26 }
 0x165   : > { %v847_v23 = vadd.f32 %v846_v34, %v673_v26 }
 0x166   : > { %v917_v36 = vadd.f32 %v916_v33, %v903_v35 }
 0x167   : > { %v861_v38 = vadd.f32 %v860_v3, %v847_v23 }
 0x168   : > { %vm923_vm12 = vcmp.gt.f32.partialorder %v917_v36, 0.0  ;;  %v929_v40 = vmul.f32 0.2, %v917_v36 }
 0x169   : > { %v927_v45 = vmul.f32 0.2, %v861_v38  ;;  %vm921_vm4 = vcmp.gt.f32.partialorder %v861_v38, 0.0 }
 0x16a   : > { %v874_v18 = vpop.f32.mrf.mxu2  ;;  %v935_v42 = vsel %vm923_vm12, %v917_v36, %v929_v40  ;;  %vm988_vm12 = vcmask 1043608   ;;  %v1317_v40 = vld [vmem:[%s2512_s4 + $0x8] sm:$0xff] }
 0x16b   : > { %v875_v46 = vadd.f32 %v874_v18, %v673_v26  ;;  %v953_v47 = vsel %vm2294_vm11, %v935_v42, 0.0  ;;  %v904_v31 = vpop.f32.mrf.mxu1  ;;  %v933_v59 = vsel %vm921_vm4, %v861_v38, %v927_v45  ;;  %vm989_vm4 = vcmask 1047556  }
 0x16c   : > { %v848_v20 = vpop.f32.mrf.mxu0  ;;  %v958_v32 = vpack.c.bf16 %v953_v47, %v953_v47  ;;  %v905_v50 = vadd.f32 %v904_v31, %v678_v43  ;;  %v951_v63 = vsel %vm2309_vm7, %v933_v59, 0.0 }
 0x16d   : > { %v889_v52 = vadd.f32 %v888_v4, %v875_v46  ;;  %v849_v53 = vadd.f32 %v848_v20, %v678_v43 }
 0x16e   : > { %967 = vrot.lane.b32.xlu2 %v958_v32, %s2067_s21  ;;  %v919_v56 = vadd.f32 %v918_v49, %v905_v50 }
 0x16f   : > { %vm922_vm5 = vcmp.gt.f32.partialorder %v889_v52, 0.0  ;;  %v928_v57 = vmul.f32 0.2, %v889_v52  ;;  %v863_v58 = vadd.f32 %v862_v14, %v849_v53 }
 0x170   : > { %vm926_vm13 = vcmp.gt.f32.partialorder %v919_v56, 0.0  ;;  %v932_v60 = vmul.f32 0.2, %v919_v56 }
 0x171   : > { %v934_v61 = vsel %vm922_vm5, %v889_v52, %v928_v57  ;;  %v930_v2 = vmul.f32 0.2, %v863_v58  ;;  %vm924_vm14 = vcmp.gt.f32.partialorder %v863_v58, 0.0  ;;  %vm977_vm5 = vcmask 154624  }
 0x172   : > { %v876_v62 = vpop.f32.mrf.mxu2  ;;  %v952_v0 = vsel %vm2313_vm8, %v934_v61, 0.0  ;;  %v938_v1 = vsel %vm926_vm13, %v919_v56, %v932_v60 }
 0x173   : > { %v877_v3 = vadd.f32 %v876_v62, %v678_v43  ;;  %v957_v4 = vpack.c.bf16 %v952_v0, %v951_v63  ;;  %v956_v51 = vsel %vm2294_vm11, %v938_v1, 0.0  ;;  %v936_v8 = vsel %vm924_vm14, %v863_v58, %v930_v2 }
 0x174   : > { %v960_v5 = vpack.c.bf16 %v956_v51, %v956_v51  ;;  %v954_v10 = vsel %vm2309_vm7, %v936_v8, 0.0  ;;  %vm942_vm11 = vcmask 306328   ;;  %vm993_vm7 = vcmask 154628  }
 0x175   : > { %v891_v6 = vadd.f32 %v2285_v15, %v877_v3  ;;  %965 = vrot.lane.b32.xlu1 %v957_v4, %s2067_s21  ;;  %943 = vst.msk [vmem:[#allocation3 + $0xc] sm:$0xf] %vm942_vm11, %v2066_v28  ;;  %vm2340_vm13 = vmor %vm993_vm7, %vm369_vm0  ;;  %vm2532_vm14 = vcmask 891904  }
 0x176   : > { %971 = vrot.lane.b32.xlu2 %v960_v5, %s2067_s21  ;;  %944 = vst.msk [vmem:[#allocation3 + $0x1c] sm:$0xf] %vm942_vm11, %v2066_v28 }
 0x177   : > { %vm925_vm15 = vcmp.gt.f32.partialorder %v891_v6, 0.0  ;;  %v931_v7 = vmul.f32 0.2, %v891_v6 }
 0x179   : > { %v937_v9 = vsel %vm925_vm15, %v891_v6, %v931_v7  ;;  %vm2533_vm15 = vmmov %vm2532_vm14 }
 0x17a   : > { %v955_v11 = vsel %vm2313_vm8, %v937_v9, 0.0  ;;  %vm2335_vm8 = vmor %vm989_vm4, %vm988_vm12 }
 0x17b   : > { %v959_v12 = vpack.c.bf16 %v955_v11, %v954_v10 }
 0x17d   : > { %969 = vrot.lane.b32.xlu1 %v959_v12, %s2067_s21 }
 0x1c8   : > { %v968_v13 = vpop.permute.xlu2 %967 }
 0x1c9   : > { %v974_v15 = vrot.slane %v968_v13, 4 }
 0x1d0   : > { %v972_v26 = vpop.permute.xlu2 %971 }
 0x1d1   : > { %v976_v29 = vrot.slane %v972_v26, 4 }
 0x1e7   : > { %v966_v14 = vpop.permute.xlu1 %965 }
 0x1e8   : > { %v973_v19 = vrot.slane %v966_v14, 4 }
 0x1ea   : > { %v978_v24 = vsel %vm977_vm5, %v973_v19, %v966_v14  ;;  %v979_v28 = vsel %vm369_vm0, %v973_v19, %v974_v15 }
 0x1eb   : > { %v980_v25 = vsel %vm977_vm5, %v979_v28, %v968_v13  ;;  %991 = vst.msk [vmem:[#allocation3] sm:$0xff] %vm2335_vm8, %v978_v24 }
 0x1ec   : > { %995 = vst.msk [vmem:[#allocation3 + $0x8] sm:$0xff] %vm2340_vm13, %v980_v25 }
 0x1ef   : > { %v970_v27 = vpop.permute.xlu1 %969 }
 0x1f0   : > { %v975_v30 = vrot.slane %v970_v27, 4 }
 0x1f2   : > { %v998_v33 = vld [vmem:[#allocation3] sm:$0xff]  ;;  %v981_v34 = vsel %vm977_vm5, %v975_v30, %v970_v27  ;;  %v982_v35 = vsel %vm369_vm0, %v975_v30, %v976_v29 }
 0x1f3   : > { %1002 = vst [vmem:[#allocation2] sm:$0xff] %v998_v33  ;;  %v983_v23 = vsel %vm977_vm5, %v982_v35, %v972_v26  ;;  %1218 = vrot.lane.b32.xlu0 %v998_v33, %s2058_s24  ;;  %1184 = vrot.lane.b32.xlu1 %v998_v33, %s2059_s25  ;;  %v999_v36 = vld [vmem:[#allocation3 + $0x8] sm:$0xf] }
 0x1f4   : > { %996 = vst.msk [vmem:[#allocation3 + $0x10] sm:$0xff] %vm2335_vm8, %v981_v34  ;;  %1150 = vrot.lane.b32.xlu2 %v998_v33, %s2060_s26  ;;  %v1143_v38 = vld [vmem:[#allocation3 + $0x8] sm:$0xff] }
 0x1f5   : > { %997 = vst.msk [vmem:[#allocation3 + $0x18] sm:$0xff] %vm2340_vm13, %v983_v23 }
 0x1f6   : > { %1003 = vst [vmem:[#allocation2 + $0x8] sm:$0xf] %v999_v36 }
 0x1fb   : > { %v1000_v37 = vld [vmem:[#allocation3 + $0x10] sm:$0xff]  ;;  %1116 = vrot.lane.b32.xlu0 %v998_v33, %s2061_s27  ;;  %1082 = vrot.lane.b32.xlu1 %v998_v33, %s2063_s29 }
 0x1fc   : > { %1004 = vst [vmem:[#allocation2 + $0xc] sm:$0xff] %v1000_v37  ;;  %1048 = vrot.lane.b32.xlu2 %v998_v33, %s2064_s30  ;;  %v1001_v17 = vld [vmem:[#allocation3 + $0x18] sm:$0xf] }
 0x1fd   : > { %1005 = vst [vmem:[#allocation2 + $0x14] sm:$0xf] %v1001_v17  ;;  %v1145_v21 = vld [vmem:[#allocation3 + $0x18] sm:$0xff] }
 0x203   : > { %1152 = vrot.lane.b32.xlu0 %v1143_v38, %s2060_s26  ;;  %1220 = vrot.lane.b32.xlu1 %v1143_v38, %s2058_s24 }
 0x204   : > { %1186 = vrot.lane.b32.xlu2 %v1143_v38, %s2059_s25 }
 0x20b   : > { %1050 = vrot.lane.b32.xlu0 %v1143_v38, %s2064_s30  ;;  %1118 = vrot.lane.b32.xlu1 %v1143_v38, %s2061_s27 }
 0x20c   : > { %1084 = vrot.lane.b32.xlu2 %v1143_v38, %s2063_s29 }
 0x213   : > { %1188 = vrot.lane.b32.xlu0 %v1000_v37, %s2059_s25  ;;  %1154 = vrot.lane.b32.xlu1 %v1000_v37, %s2060_s26 }
 0x214   : > { %1222 = vrot.lane.b32.xlu2 %v1000_v37, %s2058_s24 }
 0x21b   : > { %1086 = vrot.lane.b32.xlu0 %v1000_v37, %s2063_s29  ;;  %1052 = vrot.lane.b32.xlu1 %v1000_v37, %s2064_s30 }
 0x21c   : > { %1120 = vrot.lane.b32.xlu2 %v1000_v37, %s2061_s27 }
 0x223   : > { %1224 = vrot.lane.b32.xlu0 %v1145_v21, %s2058_s24  ;;  %1190 = vrot.lane.b32.xlu1 %v1145_v21, %s2059_s25 }
 0x224   : > { %1156 = vrot.lane.b32.xlu2 %v1145_v21, %s2060_s26 }
 0x22b   : > { %1122 = vrot.lane.b32.xlu0 %v1145_v21, %s2061_s27  ;;  %1088 = vrot.lane.b32.xlu1 %v1145_v21, %s2063_s29 }
 0x22c   : > { %1054 = vrot.lane.b32.xlu2 %v1145_v21, %s2064_s30 }
 0x233   : > { %1014 = vrot.lane.b32.xlu0 %v998_v33, %s2065_s6  ;;  %1016 = vrot.lane.b32.xlu1 %v1143_v38, %s2065_s6 }
 0x234   : > { %1018 = vrot.lane.b32.xlu2 %v1000_v37, %s2065_s6 }
 0x23b   : > { %1020 = vrot.lane.b32.xlu0 %v1145_v21, %s2065_s6  ;;  %1252 = vrot.lane.b32.xlu1 %v998_v33, %s2062_s28 }
 0x23c   : > { %1254 = vrot.lane.b32.xlu2 %v1143_v38, %s2062_s28 }
 0x243   : > { %1256 = vrot.lane.b32.xlu0 %v1000_v37, %s2062_s28  ;;  %1258 = vrot.lane.b32.xlu1 %v1145_v21, %s2062_s28 }
 0x244   : > { %1320 = vperm.xlu2 %2028, %v1316_v39  }
 0x24b   : > { %1325 = vperm.xlu0 %2029, %v1317_v40  }
 0x24e   : > { %v1151_v41 = vpop.permute.xlu2 %1150 }
 0x24f   : > { %v1158_v59 = vrot.slane %v1151_v41, 4 }
 0x256   : > { %v1049_v18 = vpop.permute.xlu2 %1048 }
 0x257   : > { %v1056_v7 = vrot.slane %v1049_v18, 4 }
 0x25e   : > { %v1187_v42 = vpop.permute.xlu2 %1186 }
 0x25f   : > { %v1193_v43 = vrot.slane %v1187_v42, 4 }
 0x261   : > { %v1198_v44 = vsel %vm546_vm1, %v1187_v42, %v1193_v43 }
 0x262   : > { %1207 = vst [vmem:[#allocation2 + $0x98] sm:$0xf] %v1198_v44 }
 0x265   : > { %v1219_v45 = vpop.permute.xlu0 %1218  ;;  %v1185_v46 = vpop.permute.xlu1 %1184 }
 0x266   : > { %v1085_v47 = vpop.permute.xlu2 %1084  ;;  %v1192_v48 = vrot.slane %v1185_v46, 4  ;;  %v1226_v60 = vrot.slane %v1219_v45, 4 }
 0x267   : > { %v1091_v31 = vrot.slane %v1085_v47, 4 }
 0x268   : > { %v1196_v49 = vsel %vm369_vm0, %v1192_v48, %v1193_v43 }
 0x269   : > { %v1096_v20 = vsel %vm441_vm6, %v1085_v47, %v1091_v31  ;;  %v1197_v32 = vsel %vm546_vm1, %v1185_v46, %v1196_v49 }
 0x26a   : > { %1105 = vst [vmem:[#allocation2 + $0x50] sm:$0xf] %v1096_v20 }
 0x26b   : > { %1206 = vst [vmem:[#allocation2 + $0x90] sm:$0xff] %v1197_v32 }
 0x26d   : > { %v1117_v50 = vpop.permute.xlu0 %1116  ;;  %v1083_v52 = vpop.permute.xlu1 %1082 }
 0x26e   : > { %v2400_v53 = vpop.permute.xlu2 %1222  ;;  %v1090_v54 = vrot.slane %v1083_v52, 4  ;;  %v1124_v8 = vrot.slane %v1117_v50, 4 }
 0x26f   : > { %v1228_v40 = vrot.slane %v2400_v53, 4 }
 0x270   : > { %v1094_v55 = vsel %vm369_vm0, %v1090_v54, %v1091_v31 }
 0x271   : > { %v1095_v56 = vsel %vm441_vm6, %v1083_v52, %v1094_v55 }
 0x272   : > { %1104 = vst [vmem:[#allocation2 + $0x48] sm:$0xff] %v1095_v56 }
 0x275   : > { %v1153_v57 = vpop.permute.xlu0 %1152  ;;  %v1221_v58 = vpop.permute.xlu1 %1220 }
 0x276   : > { %v1159_v61 = vrot.slane %v1153_v57, 4  ;;  %v2404_v62 = vpop.permute.xlu2 %1120  ;;  %v1227_v63 = vrot.slane %v1221_v58, 4 }
 0x277   : > { %v1126_v52 = vrot.slane %v2404_v62, 4 }
 0x278   : > { %v1162_v0 = vsel %vm369_vm0, %v1158_v59, %v1159_v61  ;;  %v1164_v1 = vsel %vm511_vm2, %v1153_v57, %v1159_v61  ;;  %v1230_v2 = vsel %vm369_vm0, %v1226_v60, %v1227_v63  ;;  %v1232_v51 = vsel %vm581_vm3, %v1221_v58, %v1227_v63 }
 0x279   : > { %v1163_v3 = vsel %vm511_vm2, %v1151_v41, %v1162_v0  ;;  %1173 = vst [vmem:[#allocation2 + $0x80] sm:$0xf] %v1164_v1  ;;  %v1231_v4 = vsel %vm581_vm3, %v1219_v45, %v1230_v2 }
 0x27a   : > { %1172 = vst [vmem:[#allocation2 + $0x78] sm:$0xff] %v1163_v3 }
 0x27b   : > { %1240 = vst [vmem:[#allocation2 + $0xa8] sm:$0xff] %v1231_v4 }
 0x27c   : > { %1241 = vst [vmem:[#allocation2 + $0xb0] sm:$0xf] %v1232_v51 }
 0x27d   : > { %v1051_v5 = vpop.permute.xlu0 %1050  ;;  %v1119_v6 = vpop.permute.xlu1 %1118 }
 0x27e   : > { %v1057_v9 = vrot.slane %v1051_v5, 4  ;;  %v1157_v10 = vpop.permute.xlu2 %1156  ;;  %v1125_v11 = vrot.slane %v1119_v6, 4 }
 0x27f   : > { %v1161_v12 = vrot.slane %v1157_v10, 4 }
 0x280   : > { %v1060_v13 = vsel %vm369_vm0, %v1056_v7, %v1057_v9  ;;  %v1062_v14 = vsel %vm406_vm9, %v1051_v5, %v1057_v9  ;;  %v1128_v15 = vsel %vm369_vm0, %v1124_v8, %v1125_v11  ;;  %v1130_v24 = vsel %vm2533_vm15, %v1119_v6, %v1125_v11  ;;  %v1919_v9 = vld [vmem:[#allocation2 + $0x98] sm:$0xf] }
 0x281   : > { %v1061_v16 = vsel %vm406_vm9, %v1049_v18, %v1060_v13  ;;  %1071 = vst [vmem:[#allocation2 + $0x38] sm:$0xf] %v1062_v14  ;;  %v1167_v19 = vsel %vm511_vm2, %v1157_v10, %v1161_v12  ;;  %v1129_v22 = vsel %vm2532_vm14, %v1117_v50, %v1128_v15  ;;  %v1911_v13 = vld [vmem:[#allocation2 + $0x90] sm:$0xf]  ;;  %v2000_v14 = vld [vmem:[#allocation2 + $0x94] sm:$0xf] }
 0x282   : > { %1070 = vst [vmem:[#allocation2 + $0x30] sm:$0xff] %v1061_v16  ;;  %v1923_v56 = vld [vmem:[#allocation2 + $0xa8] sm:$0xf]  ;;  %v2003_v63 = vld [vmem:[#allocation2 + $0xac] sm:$0xf] }
 0x283   : > { %1175 = vst [vmem:[#allocation2 + $0x8c] sm:$0xf] %v1167_v19  ;;  %v1931_v60 = vld [vmem:[#allocation2 + $0xb0] sm:$0xf] }
 0x284   : > { %1138 = vst [vmem:[#allocation2 + $0x60] sm:$0xff] %v1129_v22 }
 0x285   : > { %1139 = vst [vmem:[#allocation2 + $0x68] sm:$0xf] %v1130_v24  ;;  %v1189_v28 = vpop.permute.xlu0 %1188  ;;  %v1155_v25 = vpop.permute.xlu1 %1154 }
 0x286   : > { %v1055_v26 = vpop.permute.xlu2 %1054  ;;  %v1160_v27 = vrot.slane %v1155_v25, 4  ;;  %v1194_v41 = vrot.slane %v1189_v28, 4 }
 0x287   : > { %v1059_v29 = vrot.slane %v1055_v26, 4 }
 0x288   : > { %v1165_v30 = vsel %vm369_vm0, %v1160_v27, %v1161_v12 }
 0x289   : > { %v1065_v33 = vsel %vm406_vm9, %v1055_v26, %v1059_v29  ;;  %v1166_v34 = vsel %vm511_vm2, %v1155_v25, %v1165_v30  ;;  %vm2534_vm2 = vcmask 736256  }
 0x28a   : > { %1073 = vst [vmem:[#allocation2 + $0x44] sm:$0xf] %v1065_v33  ;;  %v1999_v24 = vld [vmem:[#allocation2 + $0x88] sm:$0xf0]  ;;  %vm2541_vm12 = vmmov %vm2534_vm2 }
 0x28b   : > { %1174 = vst [vmem:[#allocation2 + $0x84] sm:$0xff] %v1166_v34  ;;  %v1899_v34 = vld [vmem:[#allocation2 + $0x78] sm:$0xf]  ;;  %vm2542_vm4 = vmmov %vm2534_vm2 }
 0x28c   : > { %vm2543_vm7 = vmmov %vm2534_vm2 }
 0x28d   : > { %v1087_v35 = vpop.permute.xlu0 %1086  ;;  %v1053_v23 = vpop.permute.xlu1 %1052 }
 0x28e   : > { %v2422_v36 = vpop.permute.xlu2 %1018  ;;  %v1058_v37 = vrot.slane %v1053_v23, 4  ;;  %v1092_v54 = vrot.slane %v1087_v35, 4 }
 0x290   : > { %v1063_v17 = vsel %vm369_vm0, %v1058_v37, %v1059_v29  ;;  %v1907_v29 = vld [vmem:[#allocation2 + $0x80] sm:$0xf] }
 0x291   : > { %v1064_v38 = vsel %vm406_vm9, %v1053_v23, %v1063_v17  ;;  %v1908_v33 = vor.u32 %v1999_v24, %v1907_v29 }
 0x292   : > { %1072 = vst [vmem:[#allocation2 + $0x3c] sm:$0xff] %v1064_v38  ;;  %v1901_v25 = vld [vmem:[#allocation2 + $0x84] sm:$0xf0] }
 0x295   : > { %v1225_v21 = vpop.permute.xlu0 %1224  ;;  %v1191_v39 = vpop.permute.xlu1 %1190 }
 0x296   : > { %v1229_v18 = vrot.slane %v1225_v21, 4  ;;  %v2427_v42 = vpop.permute.xlu2 %1254  ;;  %v1195_v43 = vrot.slane %v1191_v39, 4 }
 0x297   : > { %v1261_v44 = vrot.slane %v2427_v42, 4 }
 0x298   : > { %v1233_v45 = vsel %vm369_vm0, %v1228_v40, %v1229_v18  ;;  %v1235_v46 = vsel %vm581_vm3, %v1225_v21, %v1229_v18  ;;  %v1199_v47 = vsel %vm369_vm0, %v1194_v41, %v1195_v43  ;;  %v1201_v20 = vsel %vm546_vm1, %v1191_v39, %v1195_v43  ;;  %v1895_v39 = vld [vmem:[#allocation2 + $0x68] sm:$0xf] }
 0x299   : > { %v1234_v48 = vsel %vm581_vm3, %v2400_v53, %v1233_v45  ;;  %1243 = vst [vmem:[#allocation2 + $0xbc] sm:$0xf] %v1235_v46  ;;  %v1266_v31 = vsel %vm2534_vm2, %v2427_v42, %v1261_v44  ;;  %v1200_v49 = vsel %vm546_vm1, %v1189_v28, %v1199_v47  ;;  %vm2535_vm3 = vmmov %vm2532_vm14  ;;  %v1998_v28 = vld [vmem:[#allocation2 + $0x80] sm:$0xf0]  ;;  %v1024_v40 = vrot.slane %v2422_v36, 4 }
 0x29a   : > { %1242 = vst [vmem:[#allocation2 + $0xb4] sm:$0xff] %v1234_v48  ;;  %vm2536_vm1 = vmmov %vm2535_vm3  ;;  %v1900_v23 = vor.u32 %v1998_v28, %v1899_v34  ;;  %v1887_v45 = vld [vmem:[#allocation2 + $0x60] sm:$0xf]  ;;  %v1994_v46 = vld [vmem:[#allocation2 + $0x64] sm:$0xf] }
 0x29b   : > { %1275 = vst [vmem:[#allocation2 + $0xc8] sm:$0xf] %v1266_v31  ;;  %v1989_v42 = vld [vmem:[#allocation2 + $0x38] sm:$0xf0]  ;;  %vm2547_vm13 = vmmov %vm2536_vm1 }
 0x29c   : > { %1208 = vst [vmem:[#allocation2 + $0x9c] sm:$0xff] %v1200_v49  ;;  %vm2548_vm15 = vmmov %vm2536_vm1 }
 0x29d   : > { %1209 = vst [vmem:[#allocation2 + $0xa4] sm:$0xf] %v1201_v20  ;;  %v1123_v32 = vpop.permute.xlu0 %1122  ;;  %v1089_v50 = vpop.permute.xlu1 %1088  ;;  %vm2549_vm2 = vmmov %vm2536_vm1 }
 0x29e   : > { %v1127_v53 = vrot.slane %v1123_v32, 4  ;;  %v1093_v55 = vrot.slane %v1089_v50, 4 }
 0x2a0   : > { %v1131_v57 = vsel %vm369_vm0, %v1126_v52, %v1127_v53  ;;  %v1133_v58 = vsel %vm2535_vm3, %v1123_v32, %v1127_v53  ;;  %v1097_v59 = vsel %vm369_vm0, %v1092_v54, %v1093_v55  ;;  %v2005_v61 = vld [vmem:[#allocation2 + $0xb8] sm:$0xf0]  ;;  %v1099_v2 = vsel %vm441_vm6, %v1089_v50, %v1093_v55  ;;  %v1883_v55 = vld [vmem:[#allocation2 + $0x50] sm:$0xf] }
 0x2a1   : > { %v1132_v0 = vsel %vm2536_vm1, %v2404_v62, %v1131_v57  ;;  %1141 = vst [vmem:[#allocation2 + $0x74] sm:$0xf] %v1133_v58  ;;  %v1098_v1 = vsel %vm441_vm6, %v1087_v35, %v1097_v59  ;;  %v1932_v3 = vor.u32 %v2005_v61, %v1931_v60  ;;  %v2004_v4 = vld [vmem:[#allocation2 + $0xb0] sm:$0xf0]  ;;  %v1925_v51 = vld [vmem:[#allocation2 + $0xb4] sm:$0xf0] }
 0x2a2   : > { %1140 = vst [vmem:[#allocation2 + $0x6c] sm:$0xff] %v1132_v0  ;;  %v1924_v5 = vor.u32 %v2004_v4, %v1923_v56  ;;  %v1928_v6 = vor.u32 %v2003_v63, %v1925_v51  ;;  %vm2537_vm6 = vcmask 1039360   ;;  %v1997_v35 = vld [vmem:[#allocation2 + $0x7c] sm:$0xf]  ;;  %v1875_v59 = vld [vmem:[#allocation2 + $0x48] sm:$0xf] }
 0x2a3   : > { %1106 = vst [vmem:[#allocation2 + $0x54] sm:$0xff] %v1098_v1  ;;  %1540 = vmatpush.bf16.msrb.mxu0 %v1932_v3  ;;  %v2001_v7 = vld [vmem:[#allocation2 + $0x98] sm:$0xf0]  ;;  %v1913_v8 = vld [vmem:[#allocation2 + $0x9c] sm:$0xf0]  ;;  %vm2538_vm9 = vmmov %vm2537_vm6  ;;  %v1904_v37 = vor.u32 %v1997_v35, %v1901_v25 }
 0x2a4   : > { %1107 = vst [vmem:[#allocation2 + $0x5c] sm:$0xf] %v1099_v2  ;;  %1484 = vmatpush.bf16.msra.mxu3 %v1924_v5  ;;  %1512 = vmatpush.bf16.msrb.mxu2 %v1928_v6  ;;  %v2002_v62 = vld [vmem:[#allocation2 + $0xa0] sm:$0xf0]  ;;  %v1912_v19 = vor.u32 %v2001_v7, %v1911_v13  ;;  %v1916_v22 = vor.u32 %v2000_v14, %v1913_v8  ;;  %vm2539_vm10 = vmmov %vm2537_vm6  ;;  %v1991_v60 = vld [vmem:[#allocation2 + $0x4c] sm:$0xf] }
 0x2a5   : > { %v1015_v10 = vpop.permute.xlu0 %1014  ;;  %v1017_v11 = vpop.permute.xlu1 %1016  ;;  %v1920_v12 = vor.u32 %v2002_v62, %v1919_v9  ;;  %vm2540_vm11 = vmmov %vm2537_vm6  ;;  %v1990_v0 = vld [vmem:[#allocation2 + $0x40] sm:$0xf0]  ;;  %v1871_v2 = vld [vmem:[#allocation2 + $0x38] sm:$0xf] }
 0x2a6   : > { %v1022_v15 = vrot.slane %v1015_v10, 4  ;;  %v1023_v16 = vrot.slane %v1017_v11, 4  ;;  %v1568_v1 = vld [vmem:[%s2112_s23] sm:$0xff]  ;;  %v1872_v6 = vor.u32 %v1990_v0, %v1871_v2  ;;  %v1988_v8 = vld [vmem:[#allocation2 + $0x34] sm:$0xf]  ;;  %v1571_v14 = vld [vmem:[%s2112_s23 + $0x18] sm:$0xff] }
 0x2a7   : > { %1541 = vmatpush.bf16.msrb.mxu0 %v1920_v12  ;;  %v1572_v3 = vunpack.c.l.bf16 %v1568_v1  ;;  %v1573_v4 = vunpack.c.h.bf16 %v1568_v1  ;;  %v1570_v13 = vld [vmem:[%s2112_s23 + $0x10] sm:$0xff]  ;;  %v1578_v34 = vunpack.c.l.bf16 %v1571_v14  ;;  %v1579_v35 = vunpack.c.h.bf16 %v1571_v14 }
 0x2a8   : > { %v1026_v26 = vsel %vm369_vm0, %v1022_v15, %v1023_v16  ;;  %v1028_v27 = vsel %vm2537_vm6, %v1017_v11, %v1023_v16  ;;  %1485 = vmatpush.bf16.msra.mxu3 %v1912_v19  ;;  %1513 = vmatpush.bf16.msrb.mxu2 %v1916_v22  ;;  %v1996_v17 = vld [vmem:[#allocation2 + $0x70] sm:$0xf0]  ;;  %v1569_v15 = vld [vmem:[%s2112_s23 + $0x8] sm:$0xff]  ;;  %v1576_v25 = vunpack.c.l.bf16 %v1570_v13 }
 0x2a9   : > { %v1027_v30 = vsel %vm2538_vm9, %v1015_v10, %v1026_v26  ;;  %1037 = vst [vmem:[#allocation2 + $0x20] sm:$0xf] %v1028_v27  ;;  %v1995_v38 = vld [vmem:[#allocation2 + $0x68] sm:$0xf0]  ;;  %v1889_v21 = vld [vmem:[#allocation2 + $0x6c] sm:$0xf0]  ;;  %v1896_v43 = vor.u32 %v1996_v17, %v1895_v39  ;;  %v2030_v12 = vpack.i.bf16 %v1573_v4, %v1572_v3  ;;  %v1577_v26 = vunpack.c.h.bf16 %v1570_v13 }
 0x2aa   : > { %1036 = vst [vmem:[#allocation2 + $0x18] sm:$0xff] %v1027_v30  ;;  %v1888_v31 = vor.u32 %v1995_v38, %v1887_v45  ;;  %v1892_v49 = vor.u32 %v1994_v46, %v1889_v21  ;;  %v1992_v32 = vld [vmem:[#allocation2 + $0x50] sm:$0xf0]  ;;  %v1877_v50 = vld [vmem:[#allocation2 + $0x54] sm:$0xf0]  ;;  %v1574_v39 = vunpack.c.l.bf16 %v1569_v15 }
 0x2ab   : > { %1542 = vmatpush.bf16.msrb.mxu0 %v1908_v33  ;;  %v1993_v20 = vld [vmem:[#allocation2 + $0x58] sm:$0xf0]  ;;  %v1876_v61 = vor.u32 %v1992_v32, %v1875_v59  ;;  %v1880_v63 = vor.u32 %v1991_v60, %v1877_v50  ;;  %2031 = vrot.lane.b32.xlu1 %v2030_v12, %s2061_s27  ;;  %v1984_v17 = vld [vmem:[#allocation2 + $0x10] sm:$0xf0]  ;;  %v1983_v38 = vld [vmem:[#allocation2 + $0x8] sm:$0xf0]  ;;  %v2040_v21 = vpack.i.bf16 %v1577_v26, %v1576_v25 }
 0x2ac   : > { %1486 = vmatpush.bf16.msra.mxu3 %v1900_v23  ;;  %1514 = vmatpush.bf16.msrb.mxu2 %v1904_v37  ;;  %v1884_v58 = vor.u32 %v1993_v20, %v1883_v55  ;;  %v1847_v45 = vld [vmem:[#allocation2 + $0x8] sm:$0xf]  ;;  %v1833_v55 = vld [vmem:[%s2511_s3 + $0x8] sm:$0xf0] }
 0x2ad   : > { %v1021_v41 = vpop.permute.xlu0 %1020  ;;  %v1253_v18 = vpop.permute.xlu1 %1252  ;;  %v1848_v46 = vor.u32 %v1984_v17, %v1847_v45  ;;  %2041 = vrot.lane.b32.xlu0 %v2040_v21, %s2061_s27 }
 0x2ae   : > { %v1025_v47 = vrot.slane %v1021_v41, 4  ;;  %v1260_v48 = vrot.slane %v1253_v18, 4 }
 0x2af   : > { %1543 = vmatpush.bf16.msrb.mxu0 %v1896_v43  ;;  %v1575_v43 = vunpack.c.h.bf16 %v1569_v15 }
 0x2b0   : > { %v1029_v52 = vsel %vm369_vm0, %v1024_v40, %v1025_v47  ;;  %v1031_v54 = vsel %vm2539_vm10, %v1021_v41, %v1025_v47  ;;  %v1264_v53 = vsel %vm369_vm0, %v1260_v48, %v1261_v44  ;;  %1487 = vmatpush.bf16.msra.mxu3 %v1888_v31  ;;  %1515 = vmatpush.bf16.msrb.mxu2 %v1892_v49  ;;  %v1865_v44 = vld [vmem:[#allocation2 + $0x3c] sm:$0xf0]  ;;  %v1841_v40 = vld [vmem:[#allocation2 + $0xc] sm:$0xf0]  ;;  %v1982_v48 = vld [vmem:[#allocation2 + $0x4] sm:$0xf] }
 0x2b1   : > { %v1030_v56 = vsel %vm2540_vm11, %v2422_v36, %v1029_v52  ;;  %1039 = vst [vmem:[#allocation2 + $0x2c] sm:$0xf] %v1031_v54  ;;  %v1265_v57 = vsel %vm2541_vm12, %v1253_v18, %v1264_v53  ;;  %v1863_v36 = vld [vmem:[#allocation2 + $0x30] sm:$0xf]  ;;  %v1868_v10 = vor.u32 %v1988_v8, %v1865_v44  ;;  %v1859_v11 = vld [vmem:[#allocation2 + $0x20] sm:$0xf]  ;;  %v2045_v31 = vpack.i.bf16 %v1579_v35, %v1578_v34  ;;  %vm2550_vm10 = vmmov %vm2536_vm1 }
 0x2b2   : > { %1038 = vst [vmem:[#allocation2 + $0x24] sm:$0xff] %v1030_v56  ;;  %v1864_v7 = vor.u32 %v1989_v42, %v1863_v36  ;;  %v1851_v24 = vld [vmem:[#allocation2 + $0x18] sm:$0xf]  ;;  %v1985_v28 = vld [vmem:[#allocation2 + $0x1c] sm:$0xf]  ;;  %v2035_v49 = vpack.i.bf16 %v1575_v43, %v1574_v39  ;;  %v1844_v32 = vor.u32 %v1982_v48, %v1841_v40  ;;  %v1321_v42 = vpop.permute.xlu2 %1320  ;;  %vm2551_vm11 = vmmov %vm2536_vm1 }
 0x2b3   : > { %1274 = vst [vmem:[#allocation2 + $0xc0] sm:$0xff] %v1265_v57  ;;  %1544 = vmatpush.bf16.msrb.mxu0 %v1884_v58  ;;  %v1831_v41 = vld [vmem:[%s2511_s3] sm:$0xf]  ;;  %v1981_v18 = vld [vmem:[%s2511_s3 + $0x4] sm:$0xf0]  ;;  %2046 = vrot.lane.b32.xlu1 %v2045_v31, %s2061_s27 }
 0x2b4   : > { %1488 = vmatpush.bf16.msra.mxu3 %v1876_v61  ;;  %1516 = vmatpush.bf16.msrb.mxu2 %v1880_v63  ;;  %v1839_v47 = vld [vmem:[#allocation2] sm:$0xf]  ;;  %v1832_v50 = vor.u32 %v1981_v18, %v1831_v41  ;;  %v1980_v52 = vld [vmem:[%s2511_s3 + $0x4] sm:$0xf]  ;;  %v1943_v61 = vld [vmem:[#allocation2 + $0xc8] sm:$0xf] }
 0x2b5   : > { %v1257_v51 = vpop.permute.xlu0 %1256  ;;  %v1259_v5 = vpop.permute.xlu1 %1258  ;;  %v1840_v20 = vor.u32 %v1983_v38, %v1839_v47  ;;  %2036 = vrot.lane.b32.xlu2 %v2035_v49, %s2061_s27  ;;  %v1836_v0 = vor.u32 %v1980_v52, %v1833_v55  ;;  %s2009_s27 = smul.u32 48, %s2553_s19 }
 0x2b6   : > { %v1262_v9 = vrot.slane %v1257_v51, 4  ;;  %v1263_v62 = vrot.slane %v1259_v5, 4 }
 0x2b7   : > { %1545 = vmatpush.bf16.msrb.mxu0 %v1872_v6  ;;  %s2492_s12 = scalar_lea.vmem %s2513_s5, %s2009_s27 }
 0x2b8   : > { %v1267_v16 = vsel %vm369_vm0, %v1262_v9, %v1263_v62  ;;  %v1269_v19 = vsel %vm2542_vm4, %v1259_v5, %v1263_v62  ;;  %1489 = vmatpush.bf16.msra.mxu3 %v1864_v7  ;;  %1517 = vmatpush.bf16.msrb.mxu2 %v1868_v10  ;;  %v1987_v22 = vld [vmem:[#allocation2 + $0x28] sm:$0xf0]  ;;  %vm2544_vm0 = vcmask 130048  }
 0x2b9   : > { %v1268_v27 = vsel %vm2543_vm7, %v1257_v51, %v1267_v16  ;;  %1277 = vst [vmem:[#allocation2 + $0xd4] sm:$0xf] %v1269_v19  ;;  %v1860_v29 = vor.u32 %v1987_v22, %v1859_v11  ;;  %v1986_v30 = vld [vmem:[#allocation2 + $0x20] sm:$0xf0]  ;;  %v1853_v33 = vld [vmem:[#allocation2 + $0x24] sm:$0xf0]  ;;  %vm2545_vm5 = vmmov %vm2544_vm0 }
 0x2ba   : > { %1276 = vst [vmem:[#allocation2 + $0xcc] sm:$0xff] %v1268_v27  ;;  %v1852_v23 = vor.u32 %v1986_v30, %v1851_v24  ;;  %v1856_v37 = vor.u32 %v1985_v28, %v1853_v33  ;;  %v1935_v54 = vld [vmem:[#allocation2 + $0xc0] sm:$0xf]  ;;  %v2006_v57 = vld [vmem:[#allocation2 + $0xc4] sm:$0xf]  ;;  %vm2546_vm8 = vmmov %vm2544_vm0 }
 0x2bb   : > { %1546 = vmatpush.bf16.msrb.mxu0 %v1860_v29 }
 0x2bc   : > { %1490 = vmatpush.bf16.msra.mxu3 %v1852_v23  ;;  %1518 = vmatpush.bf16.msrb.mxu2 %v1856_v37 }
 0x2bd   : > { %v1326_v1 = vpop.permute.xlu0 %1325 }
 0x2bf   : > { %1547 = vmatpush.bf16.msrb.mxu0 %v1848_v46 }
 0x2c0   : > { %1491 = vmatpush.bf16.msra.mxu3 %v1840_v20  ;;  %1519 = vmatpush.bf16.msrb.mxu2 %v1844_v32  ;;  %v2008_v53 = vld [vmem:[#allocation2 + $0xd0] sm:$0xf0] }
 0x2c1   : > { %v2007_v56 = vld [vmem:[#allocation2 + $0xc8] sm:$0xf0]  ;;  %v1937_v58 = vld [vmem:[#allocation2 + $0xcc] sm:$0xf0]  ;;  %v1944_v63 = vor.u32 %v2008_v53, %v1943_v61 }
 0x2c2   : > { %1548 = vmatmul.bf16.vlgmr.msrb.gmra.mxu0 %v1832_v50  ;;  %v1936_v59 = vor.u32 %v2007_v56, %v1935_v54  ;;  %v1940_v60 = vor.u32 %v2006_v57, %v1937_v58 }
 0x2c3   : > { %1492 = vmatmul.bf16.vlgmr.msra.gmra.mxu3 %v1832_v50  ;;  %1520 = vmatmul.bf16.vlgmr.msrb.gmra.mxu2 %v1832_v50 }
 0x2c4   : > { %1505 = vmatpush.bf16.msrb.mxu3 %v1936_v59  ;;  %1533 = vmatpush.bf16.msra.mxu1 %v1940_v60 }
 0x2c7   : > { %1946 = vmatmul.msk.bf16.vlgmr.msra.gmra.mxu1 %vm2544_vm0, %v1836_v0 }
 0x2c8   : > { %1561 = vmatpush.bf16.msrb.mxu1 %v1944_v63 }
 0x2d3   : > { %1945 = vmatmul.msk.bf16.vlgmr.msrb.gmra.mxu3 %vm2545_vm5, %v1836_v0 }
 0x2d7   : > { %1947 = vmatmul.msk.bf16.vlgmr.msrb.gmra.mxu1 %vm2546_vm8, %v1836_v0 }
 0x30f   : > { %v2037_v2 = vpop.permute.xlu2 %2036 }
 0x310   : > { %v2038_v3 = vunpack.i.l.bf16 %v2037_v2  ;;  %v2039_v28 = vunpack.i.h.bf16 %v2037_v2 }
 0x312   : > { %v1607_v34 = vsel %vm2549_vm2, %v2038_v3, %v2039_v28 }
 0x31d   : > { %v2032_v44 = vpop.permute.xlu1 %2031 }
 0x31e   : > { %v2034_v4 = vunpack.i.h.bf16 %v2032_v44  ;;  %v2033_v27 = vunpack.i.l.bf16 %v2032_v44 }
 0x31f   : > { %v2042_v9 = vpop.permute.xlu0 %2041 }
 0x320   : > { %v1606_v7 = vsel %vm2547_vm13, %v2034_v4, %v2038_v3  ;;  %v2044_v12 = vunpack.i.h.bf16 %v2042_v9  ;;  %v1605_v38 = vsel %vm2536_vm1, %v2033_v27, %v2034_v4  ;;  %v2043_v46 = vunpack.i.l.bf16 %v2042_v9 }
 0x322   : > { %v1608_v53 = vsel %vm2551_vm11, %v2043_v46, %v2044_v12 }
 0x325   : > { %v2047_v62 = vpop.permute.xlu1 %2046 }
 0x326   : > { %v2048_v13 = vunpack.i.l.bf16 %v2047_v62  ;;  %v2049_v18 = vunpack.i.h.bf16 %v2047_v62 }
 0x328   : > { %v1609_v25 = vsel %vm2548_vm15, %v2044_v12, %v2048_v13  ;;  %v1610_v20 = vsel %vm2550_vm10, %v2048_v13, %v2049_v18 }
 0x33f   : > { %v1549_v14 = vpop.f32.mrf.mxu0 }
 0x340   : > { %v1550_v29 = vadd.f32 %v1549_v14, %v1321_v42 }
 0x344   : > { %v1535_v36 = vpop.f32.mrf.mxu1 }
 0x346   : > { %v1493_v51 = vpop.f32.mrf.mxu3  ;;  %v1521_v5 = vpop.f32.mrf.mxu2 }
 0x347   : > { %v1522_v6 = vadd.f32 %v1521_v5, %v1321_v42  ;;  %v1494_v35 = vadd.f32 %v1493_v51, %v1321_v42  ;;  %v1551_v41 = vpop.f32.mrf.mxu0 }
 0x348   : > { %v1552_v47 = vadd.f32 %v1551_v41, %v1326_v1 }
 0x349   : > { %v1536_v8 = vadd.f32 %v1535_v36, %v1522_v6 }
 0x34b   : > { %v1618_v10 = vadd.f32 %v1606_v7, %v1536_v8 }
 0x34c   : > { %v1537_v11 = vpop.f32.mrf.mxu1 }
 0x34d   : > { %vm1624_vm14 = vcmp.gt.f32.partialorder %v1618_v10, 0.0  ;;  %v1630_v15 = vmul.f32 0.2, %v1618_v10 }
 0x34e   : > { %v1495_v16 = vpop.f32.mrf.mxu3  ;;  %v1523_v19 = vpop.f32.mrf.mxu2 }
 0x34f   : > { %v1636_v22 = vsel %vm1624_vm14, %v1618_v10, %v1630_v15  ;;  %v1524_v24 = vadd.f32 %v1523_v19, %v1326_v1  ;;  %v1496_v32 = vadd.f32 %v1495_v16, %v1326_v1 }
 0x350   : > { %1642 = vst [vmem:[%s2492_s12 + $0x8] sm:$0xff] %v1636_v22 }
 0x351   : > { %v1538_v26 = vadd.f32 %v1537_v11, %v1524_v24 }
 0x353   : > { %v1621_v30 = vadd.f32 %v1609_v25, %v1538_v26 }
 0x354   : > { %v1563_v33 = vpop.f32.mrf.mxu1 }
 0x355   : > { %vm1627_vm3 = vcmp.gt.f32.partialorder %v1621_v30, 0.0  ;;  %v1633_v23 = vmul.f32 0.2, %v1621_v30  ;;  %v1564_v37 = vadd.f32 %v1563_v33, %v1550_v29 }
 0x356   : > { %v1507_v17 = vpop.f32.mrf.mxu3 }
 0x357   : > { %v1639_v21 = vsel %vm1627_vm3, %v1621_v30, %v1633_v23  ;;  %v1619_v39 = vadd.f32 %v1607_v34, %v1564_v37  ;;  %v1508_v40 = vadd.f32 %v1507_v17, %v1494_v35 }
 0x358   : > { %1645 = vst [vmem:[%s2492_s12 + $0x20] sm:$0xff] %v1639_v21 }
 0x359   : > { %vm1625_vm6 = vcmp.gt.f32.partialorder %v1619_v39, 0.0  ;;  %v1631_v43 = vmul.f32 0.2, %v1619_v39  ;;  %v1617_v45 = vadd.f32 %v1605_v38, %v1508_v40 }
 0x35b   : > { %v1637_v48 = vsel %vm1625_vm6, %v1619_v39, %v1631_v43  ;;  %vm1623_vm9 = vcmp.gt.f32.partialorder %v1617_v45, 0.0  ;;  %v1629_v31 = vmul.f32 0.2, %v1617_v45 }
 0x35c   : > { %1643 = vst [vmem:[%s2492_s12 + $0x10] sm:$0xff] %v1637_v48  ;;  %v1565_v49 = vpop.f32.mrf.mxu1 }
 0x35d   : > { %v1635_v50 = vsel %vm1623_vm9, %v1617_v45, %v1629_v31  ;;  %v1566_v52 = vadd.f32 %v1565_v49, %v1552_v47 }
 0x35e   : > { %1641 = vst [vmem:[%s2492_s12] sm:$0xff] %v1635_v50  ;;  %v1509_v54 = vpop.f32.mrf.mxu3 }
 0x35f   : > { %v1622_v55 = vadd.f32 %v1610_v20, %v1566_v52  ;;  %v1510_v56 = vadd.f32 %v1509_v54, %v1496_v32 }
 0x361   : > { %vm1628_vm12 = vcmp.gt.f32.partialorder %v1622_v55, 0.0  ;;  %v1634_v57 = vmul.f32 0.2, %v1622_v55  ;;  %v1620_v58 = vadd.f32 %v1608_v53, %v1510_v56 }
 0x363   : > { %v1640_v59 = vsel %vm1628_vm12, %v1622_v55, %v1634_v57  ;;  %vm1626_vm4 = vcmp.gt.f32.partialorder %v1620_v58, 0.0  ;;  %v1632_v60 = vmul.f32 0.2, %v1620_v58 }
 0x364   : > { %1646 = vst [vmem:[%s2492_s12 + $0x28] sm:$0xff] %v1640_v59 }
 0x365   : > { %v1638_v61 = vsel %vm1626_vm4, %v1620_v58, %v1632_v60 }
 0x366   : > { %1644 = vst [vmem:[%s2492_s12 + $0x18] sm:$0xff] %v1638_v61 }
 0x367 PF: > { %s15_s18 = sadd.s32 1, %s2056_s18  }
 0x368   : > { %p12_p4 = scmp.ge.s32.totalorder %s15_s18, 6  }
 0x36a   :  { %14 = sbr.rel (!%p12_p4) target bundleno = 1 (0x1), region = 70 }

</bundles_post_ra>
